<compile_context>
chip_gen: v6e
topology: v6e:2x2x1
jax: 0.10.0
libtpu: 0.0.40
codegen_flags: <defaults>
</compile_context>

<pallas_src>
import functools

import jax
import jax.numpy as jnp
from jax.experimental import pallas as pl
from jax.experimental.pallas import tpu as pltpu


def _round_up(x, m):
    return (x + m - 1) // m * m


TAPS3 = tuple((i, j) for i in range(3) for j in range(3))   # 3x3 stride-1 conv
TAPS2 = tuple((i, j) for i in range(2) for j in range(2))   # 2x2 conv on s2d input


# --------------------------------------------------------------------------
# In-kernel tap accumulation: acc[M, Cout] = sum_t A_t @ W_t   (f32 accum)
#   x   : (bn, Hp, Wp, K) f32 value (activation tile, already loaded)
#   w_ref: (T, K, Cout) bf16 ref (resident, constant index_map)
# --------------------------------------------------------------------------
def _accum_taps(x, w_ref, taps, Ho, Wo):
    bnb, _, _, K = x.shape
    acc = None
    for t, (di, dj) in enumerate(taps):
        # Contiguous window of the resident tile; reshape merges the spatial
        # dims into the matmul M dim (Wo kept a multiple of 8 for CIFAR shapes
        # so the merge is layout-trivial).
        a = x[:, di:di + Ho, dj:dj + Wo, :].reshape(bnb * Ho * Wo, K)
        p = jnp.dot(a.astype(jnp.bfloat16), w_ref[t],
                    preferred_element_type=jnp.float32)
        acc = p if acc is None else acc + p
    return acc


# --------------------------------------------------------------------------
# Kernels
# --------------------------------------------------------------------------
def _conv_bn_kernel(x_ref, w_ref, b_ref, o_ref, *, taps, Ho, Wo, relu):
    """conv (taps) + folded-BN bias (+ReLU); output written into the interior
    of a spatially padded buffer so the next conv needs no wrapper pad."""
    bnb = x_ref.shape[0]
    x = x_ref[...].astype(jnp.float32)
    acc = _accum_taps(x, w_ref, taps, Ho, Wo) + b_ref[...]
    if relu:
        acc = jnp.maximum(acc, 0.0)
    res = acc.reshape(bnb, Ho, Wo, -1).astype(o_ref.dtype)
    o_ref[...] = jnp.zeros(o_ref.shape, o_ref.dtype)       # zero halo border
    o_ref[:, 1:Ho + 1, 1:Wo + 1, :] = res


def _conv1_shortcut_kernel(x_ref, w1_ref, b1_ref, wsc_ref, bsc_ref,
                           o1_ref, osc_ref, *, taps, sc_tap, Ho, Wo):
    """Fused conv1+bn1+relu AND 1x1-projection shortcut+bn_sc: one read of the
    input activation, two padded-layout outputs."""
    bnb = x_ref.shape[0]
    x = x_ref[...].astype(jnp.float32)
    acc1 = jnp.maximum(_accum_taps(x, w1_ref, taps, Ho, Wo) + b1_ref[...], 0.0)
    accs = _accum_taps(x, wsc_ref, (sc_tap,), Ho, Wo) + bsc_ref[...]
    r1 = acc1.reshape(bnb, Ho, Wo, -1).astype(o1_ref.dtype)
    rs = accs.reshape(bnb, Ho, Wo, -1).astype(osc_ref.dtype)
    o1_ref[...] = jnp.zeros(o1_ref.shape, o1_ref.dtype)
    o1_ref[:, 1:Ho + 1, 1:Wo + 1, :] = r1
    osc_ref[...] = jnp.zeros(osc_ref.shape, osc_ref.dtype)
    osc_ref[:, 1:Ho + 1, 1:Wo + 1, :] = rs


def _conv_bn_res_kernel(x_ref, w_ref, b_ref, r_ref, o_ref, *, taps, Ho, Wo):
    """conv2 + bn2 + residual add (read from a padded-layout buffer) + ReLU."""
    bnb = x_ref.shape[0]
    x = x_ref[...].astype(jnp.float32)
    acc = _accum_taps(x, w_ref, taps, Ho, Wo) + b_ref[...]
    r = r_ref[...].astype(jnp.float32)[:, 1:Ho + 1, 1:Wo + 1, :]
    acc = acc + r.reshape(bnb * Ho * Wo, r.shape[-1])
    out = jnp.maximum(acc, 0.0)
    o_ref[...] = out.reshape(bnb, Ho, Wo, -1).astype(o_ref.dtype)


# --------------------------------------------------------------------------
# Tiling / VMEM planning
# --------------------------------------------------------------------------
def _tile_vmem_estimate(bnb, Hp, Wp, K, Ho, Wo, Cout, n_taps, n_heads, has_res):
    lane = lambda c: _round_up(c, 128)
    sub = lambda w: _round_up(w, 8)
    x_buf = bnb * Hp * sub(Wp) * lane(K) * 2          # input block (double-buf)
    x_val = bnb * Hp * sub(Wp) * lane(K) * 4          # in-kernel f32 tile copy
    acc = bnb * Ho * sub(Wo) * lane(Cout) * 4
    out_buf = bnb * (Ho + 2) * sub(Wo + 2) * lane(Cout) * 2
    res_buf = out_buf if has_res else 0
    w_buf = (n_taps + max(n_heads - 1, 0)) * sub(K) * lane(Cout) * 2
    return (2 * x_buf + x_val + n_heads * (2 * acc + 2 * out_buf)
            + 2 * res_buf + 2 * w_buf + (2 << 20))


def _plan_tiles(N, Hp, Wp, K, Ho, Wo, Cout, n_taps, n_heads, has_res,
                target_bytes=512 * 1024, vmem_budget=30 * 2 ** 20):
    """Pick the batch tile size and a vmem limit.

    Keeps >= 2 grid steps when N >= 2 (so both v7x TensorCores get work) and
    keeps the per-step working set well under v7x's 64 MiB physical VMEM."""
    img_bytes = Hp * Wp * K * 2
    bnb = max(1, min(N, target_bytes // max(img_bytes, 1)))
    if N >= 2:
        bnb = max(1, min(bnb, N // 2))
    while bnb > 1 and _tile_vmem_estimate(bnb, Hp, Wp, K, Ho, Wo, Cout,
                                          n_taps, n_heads, has_res) > vmem_budget:
        bnb -= 1
    while N % bnb:
        bnb -= 1
    est = _tile_vmem_estimate(bnb, Hp, Wp, K, Ho, Wo, Cout,
                              n_taps, n_heads, has_res)
    vmem_limit = int(min(44 * 2 ** 20, max(16 * 2 ** 20, 2 * est)))
    return bnb, vmem_limit


# --------------------------------------------------------------------------
# pallas_call wrappers
# --------------------------------------------------------------------------
def conv_bn(x_in, w_taps, bias, *, taps, Ho, Wo, relu, out_dtype=jnp.bfloat16):
    N, Hp, Wp, K = x_in.shape
    T, _, Cout = w_taps.shape
    bnb, vmem_limit = _plan_tiles(N, Hp, Wp, K, Ho, Wo, Cout, T, 1, False)
    kern = functools.partial(_conv_bn_kernel, taps=taps, Ho=Ho, Wo=Wo, relu=relu)
    return pl.pallas_call(
        kern,
        out_shape=jax.ShapeDtypeStruct((N, Ho + 2, Wo + 2, Cout), out_dtype),
        grid=(N // bnb,),
        in_specs=[
            pl.BlockSpec((bnb, Hp, Wp, K), lambda g: (g, 0, 0, 0)),
            pl.BlockSpec((T, K, Cout), lambda g: (0, 0, 0)),
            pl.BlockSpec((1, Cout), lambda g: (0, 0)),
        ],
        out_specs=pl.BlockSpec((bnb, Ho + 2, Wo + 2, Cout), lambda g: (g, 0, 0, 0)),
        compiler_params=pltpu.CompilerParams(
            dimension_semantics=("parallel",), vmem_limit_bytes=vmem_limit),
    )(x_in, w_taps, bias)


def conv1_shortcut_fused(x_in, w1, b1, wsc, bsc, *, taps, sc_tap, Ho, Wo,
                         out_dtype=jnp.bfloat16):
    N, Hp, Wp, K = x_in.shape
    T, _, Cout = w1.shape
    bnb, vmem_limit = _plan_tiles(N, Hp, Wp, K, Ho, Wo, Cout, T, 2, False)
    kern = functools.partial(_conv1_shortcut_kernel, taps=taps, sc_tap=sc_tap,
                             Ho=Ho, Wo=Wo)
    out_img = jax.ShapeDtypeStruct((N, Ho + 2, Wo + 2, Cout), out_dtype)
    out_block = pl.BlockSpec((bnb, Ho + 2, Wo + 2, Cout), lambda g: (g, 0, 0, 0))
    return pl.pallas_call(
        kern,
        out_shape=(out_img, out_img),
        grid=(N // bnb,),
        in_specs=[
            pl.BlockSpec((bnb, Hp, Wp, K), lambda g: (g, 0, 0, 0)),
            pl.BlockSpec((T, K, Cout), lambda g: (0, 0, 0)),
            pl.BlockSpec((1, Cout), lambda g: (0, 0)),
            pl.BlockSpec((1, K, Cout), lambda g: (0, 0, 0)),
            pl.BlockSpec((1, Cout), lambda g: (0, 0)),
        ],
        out_specs=(out_block, out_block),
        compiler_params=pltpu.CompilerParams(
            dimension_semantics=("parallel",), vmem_limit_bytes=vmem_limit),
    )(x_in, w1, b1, wsc, bsc)


def conv_bn_residual(x_in, w_taps, bias, res_pad, *, taps, Ho, Wo,
                     out_dtype=jnp.bfloat16):
    N, Hp, Wp, K = x_in.shape
    T, _, Cout = w_taps.shape
    assert res_pad.shape == (N, Ho + 2, Wo + 2, Cout), res_pad.shape
    bnb, vmem_limit = _plan_tiles(N, Hp, Wp, K, Ho, Wo, Cout, T, 1, True)
    kern = functools.partial(_conv_bn_res_kernel, taps=taps, Ho=Ho, Wo=Wo)
    return pl.pallas_call(
        kern,
        out_shape=jax.ShapeDtypeStruct((N, Ho, Wo, Cout), out_dtype),
        grid=(N // bnb,),
        in_specs=[
            pl.BlockSpec((bnb, Hp, Wp, K), lambda g: (g, 0, 0, 0)),
            pl.BlockSpec((T, K, Cout), lambda g: (0, 0, 0)),
            pl.BlockSpec((1, Cout), lambda g: (0, 0)),
            pl.BlockSpec((bnb, Ho + 2, Wo + 2, Cout), lambda g: (g, 0, 0, 0)),
        ],
        out_specs=pl.BlockSpec((bnb, Ho, Wo, Cout), lambda g: (g, 0, 0, 0)),
        compiler_params=pltpu.CompilerParams(
            dimension_semantics=("parallel",), vmem_limit_bytes=vmem_limit),
    )(x_in, w_taps, bias, res_pad)


# --------------------------------------------------------------------------
# Weight / BN folding helpers (plain JAX, tiny tensors)
# --------------------------------------------------------------------------
def fold_bn(bn, eps=1e-5):
    scale = bn["gamma"] / jnp.sqrt(bn["var"] + eps)
    bias = bn["beta"] - bn["mean"] * scale
    return scale, bias


def _w3x3_taps(w, scale):
    # PyTorch conv weight [O, I, 3, 3] -> (9, I, O) tap-major, BN scale folded.
    O, I = w.shape[0], w.shape[1]
    wt = jnp.transpose(w, (2, 3, 1, 0)).reshape(9, I, O) * scale[None, None, :]
    return wt.astype(jnp.bfloat16)


def _w3x3_s2d_taps(w, scale):
    # 3x3 stride-2 conv re-expressed as a 2x2 stride-1 conv over the
    # space-to-depth input: (4 taps, 4*I channels ordered [pi, pj, ci], O).
    O, I = w.shape[0], w.shape[1]
    wk = jnp.transpose(w, (2, 3, 1, 0))              # [ki, kj, I, O]
    full = jnp.zeros((2, 2, 2, 2, I, O), w.dtype)    # [Ih, Jw, pi, pj, I, O]
    for Ih in range(2):
        for pi in range(2):
            ki = 2 * Ih + pi
            if ki > 2:
                continue
            for Jw in range(2):
                for pj in range(2):
                    kj = 2 * Jw + pj
                    if kj > 2:
                        continue
                    full = full.at[Ih, Jw, pi, pj].set(wk[ki, kj])
    full = full * scale[None, None, None, None, None, :]
    return full.reshape(4, 4 * I, O).astype(jnp.bfloat16)


def _w1x1_sc_taps(w, scale, *, s2d):
    # 1x1 projection shortcut as a single-tap (1, K, O) matrix.
    O, I = w.shape[0], w.shape[1]
    w2 = jnp.transpose(w[:, :, 0, 0], (1, 0)) * scale[None, :]   # (I, O)
    if s2d:
        # stride-2: the shortcut reads phase (1, 1) of the space-to-depth input.
        full = jnp.zeros((1, 4 * I, O), w2.dtype)
        full = full.at[0, 3 * I:4 * I, :].set(w2)
    else:
        full = w2.reshape(1, I, O)
    return full.astype(jnp.bfloat16)


# --------------------------------------------------------------------------
# BasicBlock forward (NCHW in / NCHW out, matching PyTorch)
# --------------------------------------------------------------------------
@functools.partial(jax.jit, static_argnums=(2,))
def basic_block_forward(x_nchw, params, stride):
    N, Cin, H, W = x_nchw.shape
    Cout = params["conv1_w"].shape[0]
    assert stride in (1, 2), "ResNet-CIFAR BasicBlock only uses stride 1 or 2"
    # Note: CIFAR spatial sizes (32/16/8) keep Wo a multiple of 8, which keeps
    # the in-kernel spatial-merge reshapes layout-trivial.

    s1, b1 = fold_bn(params["bn1"])
    s2, b2 = fold_bn(params["bn2"])

    x = jnp.transpose(x_nchw, (0, 2, 3, 1)).astype(jnp.bfloat16)   # NHWC bf16
    x_pad = jnp.pad(x, ((0, 0), (1, 1), (1, 1), (0, 0)))           # halo for pad=1

    if stride == 2:
        assert H % 2 == 0 and W % 2 == 0
        Hp, Wp = H + 2, W + 2
        # space-to-depth so the stride-2 3x3 conv becomes a stride-1 2x2 conv.
        x_in = (x_pad.reshape(N, Hp // 2, 2, Wp // 2, 2, Cin)
                .transpose(0, 1, 3, 2, 4, 5)
                .reshape(N, Hp // 2, Wp // 2, 4 * Cin))
        taps1, w1 = TAPS2, _w3x3_s2d_taps(params["conv1_w"], s1)
        Ho, Wo, sc_tap = H // 2, W // 2, (0, 0)
    else:
        x_in = x_pad
        taps1, w1 = TAPS3, _w3x3_taps(params["conv1_w"], s1)
        Ho, Wo, sc_tap = H, W, (1, 1)

    b1v = b1.reshape(1, Cout).astype(jnp.float32)
    b2v = b2.reshape(1, Cout).astype(jnp.float32)
    use_proj = (stride != 1) or (Cin != Cout)

    if use_proj:
        ssc, bsc = fold_bn(params["sc_bn"])
        wsc = _w1x1_sc_taps(params["sc_w"], ssc, s2d=(stride == 2))
        y1_pad, res_pad = conv1_shortcut_fused(
            x_in, w1, b1v, wsc, bsc.reshape(1, Cout).astype(jnp.float32),
            taps=taps1, sc_tap=sc_tap, Ho=Ho, Wo=Wo)
    else:
        y1_pad = conv_bn(x_in, w1, b1v, taps=taps1, Ho=Ho, Wo=Wo, relu=True)
        res_pad = x_pad                      # identity shortcut: interior is x

    w2 = _w3x3_taps(params["conv2_w"], s2)
    out = conv_bn_residual(y1_pad, w2, b2v, res_pad, taps=TAPS3, Ho=Ho, Wo=Wo)
    # NHWC->NCHW on bf16; single f32 cast at the end.
    return jnp.transpose(out, (0, 3, 1, 2)).astype(jnp.float32)


# --------------------------------------------------------------------------
# Pure-JAX f32 reference (lax.conv) for the correctness check
# --------------------------------------------------------------------------
def reference_forward(x, params, stride, eps=1e-5):
    def conv(x, w, s, p):
        return jax.lax.conv_general_dilated(
            x, w, (s, s), [(p, p), (p, p)],
            dimension_numbers=("NCHW", "OIHW", "NCHW"))

    def bn(x, p):
        sc = p["gamma"] / jnp.sqrt(p["var"] + eps)
        bi = p["beta"] - p["mean"] * sc
        return x * sc[None, :, None, None] + bi[None, :, None, None]

    in_planes, planes = x.shape[1], params["conv1_w"].shape[0]
    out = jnp.maximum(bn(conv(x, params["conv1_w"], stride, 1), params["bn1"]), 0.0)
    out = bn(conv(out, params["conv2_w"], 1, 1), params["bn2"])
    if stride != 1 or in_planes != planes:
        sc = bn(conv(x, params["sc_w"], stride, 0), params["sc_bn"])
    else:
        sc = x
    return jnp.maximum(out + sc, 0.0)


def make_params(key, in_planes, planes):
    ks = jax.random.split(key, 16)

    def bn_params(k):
        k1, k2, k3, k4 = jax.random.split(k, 4)
        return {
            "gamma": 1.0 + 0.1 * jax.random.normal(k1, (planes,), jnp.float32),
            "beta": 0.1 * jax.random.normal(k2, (planes,), jnp.float32),
            "mean": 0.1 * jax.random.normal(k3, (planes,), jnp.float32),
            "var": 0.5 + jax.random.uniform(k4, (planes,), jnp.float32),
        }

    return {
        "conv1_w": 0.2 * jax.random.normal(ks[0], (planes, in_planes, 3, 3), jnp.float32),
        "conv2_w": 0.2 * jax.random.normal(ks[1], (planes, planes, 3, 3), jnp.float32),
        "sc_w":    0.2 * jax.random.normal(ks[2], (planes, in_planes, 1, 1), jnp.float32),
        "bn1": bn_params(ks[3]),
        "bn2": bn_params(ks[4]),
        "sc_bn": bn_params(ks[5]),
    }


if __name__ == "__main__":
    def check(in_planes, planes, stride, N, H, W, key):
        k_params, k_x = jax.random.split(key)
        params = make_params(k_params, in_planes, planes)
        x = jax.random.normal(k_x, (N, in_planes, H, W), jnp.float32)

        out = jax.block_until_ready(basic_block_forward(x, params, stride))
        ref = jax.block_until_ready(reference_forward(x, params, stride))
        assert out.shape == ref.shape, (out.shape, ref.shape)
        max_err = float(jnp.max(jnp.abs(out - ref)))
        scale = 1.0 + float(jnp.max(jnp.abs(ref)))
        # bf16 operands / bf16 intermediates vs an f32 lax.conv reference.
        assert max_err < 6e-2 * scale, f"mismatch: max_err={max_err} scale={scale}"

    key = jax.random.PRNGKey(0)
    k1, k2 = jax.random.split(key)
    check(4, 8, 2, 2, 16, 16, k1)   # downsampling block, fused 1x1-conv shortcut
    check(8, 8, 1, 2, 8, 8, k2)     # identity-shortcut block

    print("KERNEL_OK")
</pallas_src>

<mosaic_0001>
module attributes {stable_mosaic.version = 11 : i64} {
  func.func @_conv_bn_res_kernel(%arg0: i32, %arg1: memref<1x10x10x8xbf16, #tpu.memory_space<vmem>>, %arg2: memref<9x8x8xbf16, #tpu.memory_space<vmem>>, %arg3: memref<1x8xf32, #tpu.memory_space<vmem>>, %arg4: memref<1x10x10x8xbf16, #tpu.memory_space<vmem>>, %arg5: memref<1x8x8x8xbf16, #tpu.memory_space<vmem>>) attributes {dimension_semantics = [#tpu.dimension_semantics<parallel>], iteration_bounds = array<i64: 2>, scalar_prefetch = 0 : i64, scratch_operands = 0 : i64, tpu.core_type = #tpu.core_type<tc>, window_params = [{transform_indices = @transform_0, window_bounds = array<i64: 1, 10, 10, 8>}, {pipeline_mode = #tpu.pipeline_mode<synchronous>, transform_indices = @transform_1, window_bounds = array<i64: 9, 8, 8>}, {pipeline_mode = #tpu.pipeline_mode<synchronous>, transform_indices = @transform_2, window_bounds = array<i64: 1, 8>}, {transform_indices = @transform_3, window_bounds = array<i64: 1, 10, 10, 8>}, {transform_indices = @transform_4, window_bounds = array<i64: 1, 8, 8, 8>}]} {
    %c0 = arith.constant 0 : index
    %c0_0 = arith.constant 0 : index
    %c0_1 = arith.constant 0 : index
    %c0_2 = arith.constant 0 : index
    %0 = vector.load %arg1[%c0, %c0_0, %c0_1, %c0_2] : memref<1x10x10x8xbf16, #tpu.memory_space<vmem>>, vector<1x10x10x8xbf16>
    %1 = arith.extf %0 : vector<1x10x10x8xbf16> to vector<1x10x10x8xf32>
    %2 = vector.extract_strided_slice %1 {offsets = [0, 0, 0, 0], sizes = [1, 8, 8, 8], strides = [1, 1, 1, 1]} : vector<1x10x10x8xf32> to vector<1x8x8x8xf32>
    %3 = vector.shape_cast %2 : vector<1x8x8x8xf32> to vector<64x8xf32>
    %4 = arith.truncf %3 : vector<64x8xf32> to vector<64x8xbf16>
    %c0_3 = arith.constant 0 : index
    %c0_4 = arith.constant 0 : index
    %c0_5 = arith.constant 0 : index
    %5 = vector.load %arg2[%c0_3, %c0_4, %c0_5] : memref<9x8x8xbf16, #tpu.memory_space<vmem>>, vector<1x8x8xbf16>
    %6 = vector.shape_cast %5 : vector<1x8x8xbf16> to vector<8x8xbf16>
    %cst = arith.constant dense<0.000000e+00> : vector<64x8xf32>
    %7 = tpu.matmul %4, %6, %cst {dimension_numbers = #tpu.dot_dimension_numbers<[1], [0], [0], [1], [0, 0, 1, 1], [], []>} : vector<64x8xbf16>, vector<8x8xbf16>, vector<64x8xf32> -> vector<64x8xf32>
    %8 = vector.extract_strided_slice %1 {offsets = [0, 0, 1, 0], sizes = [1, 8, 8, 8], strides = [1, 1, 1, 1]} : vector<1x10x10x8xf32> to vector<1x8x8x8xf32>
    %9 = vector.shape_cast %8 : vector<1x8x8x8xf32> to vector<64x8xf32>
    %10 = arith.truncf %9 : vector<64x8xf32> to vector<64x8xbf16>
    %c1 = arith.constant 1 : index
    %c0_6 = arith.constant 0 : index
    %c0_7 = arith.constant 0 : index
    %11 = vector.load %arg2[%c1, %c0_6, %c0_7] : memref<9x8x8xbf16, #tpu.memory_space<vmem>>, vector<1x8x8xbf16>
    %12 = vector.shape_cast %11 : vector<1x8x8xbf16> to vector<8x8xbf16>
    %cst_8 = arith.constant dense<0.000000e+00> : vector<64x8xf32>
    %13 = tpu.matmul %10, %12, %cst_8 {dimension_numbers = #tpu.dot_dimension_numbers<[1], [0], [0], [1], [0, 0, 1, 1], [], []>} : vector<64x8xbf16>, vector<8x8xbf16>, vector<64x8xf32> -> vector<64x8xf32>
    %14 = arith.addf %7, %13 : vector<64x8xf32>
    %15 = vector.extract_strided_slice %1 {offsets = [0, 0, 2, 0], sizes = [1, 8, 8, 8], strides = [1, 1, 1, 1]} : vector<1x10x10x8xf32> to vector<1x8x8x8xf32>
    %16 = vector.shape_cast %15 : vector<1x8x8x8xf32> to vector<64x8xf32>
    %17 = arith.truncf %16 : vector<64x8xf32> to vector<64x8xbf16>
    %c2 = arith.constant 2 : index
    %c0_9 = arith.constant 0 : index
    %c0_10 = arith.constant 0 : index
    %18 = vector.load %arg2[%c2, %c0_9, %c0_10] : memref<9x8x8xbf16, #tpu.memory_space<vmem>>, vector<1x8x8xbf16>
    %19 = vector.shape_cast %18 : vector<1x8x8xbf16> to vector<8x8xbf16>
    %cst_11 = arith.constant dense<0.000000e+00> : vector<64x8xf32>
    %20 = tpu.matmul %17, %19, %cst_11 {dimension_numbers = #tpu.dot_dimension_numbers<[1], [0], [0], [1], [0, 0, 1, 1], [], []>} : vector<64x8xbf16>, vector<8x8xbf16>, vector<64x8xf32> -> vector<64x8xf32>
    %21 = arith.addf %14, %20 : vector<64x8xf32>
    %22 = vector.extract_strided_slice %1 {offsets = [0, 1, 0, 0], sizes = [1, 8, 8, 8], strides = [1, 1, 1, 1]} : vector<1x10x10x8xf32> to vector<1x8x8x8xf32>
    %23 = vector.shape_cast %22 : vector<1x8x8x8xf32> to vector<64x8xf32>
    %24 = arith.truncf %23 : vector<64x8xf32> to vector<64x8xbf16>
    %c3 = arith.constant 3 : index
    %c0_12 = arith.constant 0 : index
    %c0_13 = arith.constant 0 : index
    %25 = vector.load %arg2[%c3, %c0_12, %c0_13] : memref<9x8x8xbf16, #tpu.memory_space<vmem>>, vector<1x8x8xbf16>
    %26 = vector.shape_cast %25 : vector<1x8x8xbf16> to vector<8x8xbf16>
    %cst_14 = arith.constant dense<0.000000e+00> : vector<64x8xf32>
    %27 = tpu.matmul %24, %26, %cst_14 {dimension_numbers = #tpu.dot_dimension_numbers<[1], [0], [0], [1], [0, 0, 1, 1], [], []>} : vector<64x8xbf16>, vector<8x8xbf16>, vector<64x8xf32> -> vector<64x8xf32>
    %28 = arith.addf %21, %27 : vector<64x8xf32>
    %29 = vector.extract_strided_slice %1 {offsets = [0, 1, 1, 0], sizes = [1, 8, 8, 8], strides = [1, 1, 1, 1]} : vector<1x10x10x8xf32> to vector<1x8x8x8xf32>
    %30 = vector.shape_cast %29 : vector<1x8x8x8xf32> to vector<64x8xf32>
    %31 = arith.truncf %30 : vector<64x8xf32> to vector<64x8xbf16>
    %c4 = arith.constant 4 : index
    %c0_15 = arith.constant 0 : index
    %c0_16 = arith.constant 0 : index
    %32 = vector.load %arg2[%c4, %c0_15, %c0_16] : memref<9x8x8xbf16, #tpu.memory_space<vmem>>, vector<1x8x8xbf16>
    %33 = vector.shape_cast %32 : vector<1x8x8xbf16> to vector<8x8xbf16>
    %cst_17 = arith.constant dense<0.000000e+00> : vector<64x8xf32>
    %34 = tpu.matmul %31, %33, %cst_17 {dimension_numbers = #tpu.dot_dimension_numbers<[1], [0], [0], [1], [0, 0, 1, 1], [], []>} : vector<64x8xbf16>, vector<8x8xbf16>, vector<64x8xf32> -> vector<64x8xf32>
    %35 = arith.addf %28, %34 : vector<64x8xf32>
    %36 = vector.extract_strided_slice %1 {offsets = [0, 1, 2, 0], sizes = [1, 8, 8, 8], strides = [1, 1, 1, 1]} : vector<1x10x10x8xf32> to vector<1x8x8x8xf32>
    %37 = vector.shape_cast %36 : vector<1x8x8x8xf32> to vector<64x8xf32>
    %38 = arith.truncf %37 : vector<64x8xf32> to vector<64x8xbf16>
    %c5 = arith.constant 5 : index
    %c0_18 = arith.constant 0 : index
    %c0_19 = arith.constant 0 : index
    %39 = vector.load %arg2[%c5, %c0_18, %c0_19] : memref<9x8x8xbf16, #tpu.memory_space<vmem>>, vector<1x8x8xbf16>
    %40 = vector.shape_cast %39 : vector<1x8x8xbf16> to vector<8x8xbf16>
    %cst_20 = arith.constant dense<0.000000e+00> : vector<64x8xf32>
    %41 = tpu.matmul %38, %40, %cst_20 {dimension_numbers = #tpu.dot_dimension_numbers<[1], [0], [0], [1], [0, 0, 1, 1], [], []>} : vector<64x8xbf16>, vector<8x8xbf16>, vector<64x8xf32> -> vector<64x8xf32>
    %42 = arith.addf %35, %41 : vector<64x8xf32>
    %43 = vector.extract_strided_slice %1 {offsets = [0, 2, 0, 0], sizes = [1, 8, 8, 8], strides = [1, 1, 1, 1]} : vector<1x10x10x8xf32> to vector<1x8x8x8xf32>
    %44 = vector.shape_cast %43 : vector<1x8x8x8xf32> to vector<64x8xf32>
    %45 = arith.truncf %44 : vector<64x8xf32> to vector<64x8xbf16>
    %c6 = arith.constant 6 : index
    %c0_21 = arith.constant 0 : index
    %c0_22 = arith.constant 0 : index
    %46 = vector.load %arg2[%c6, %c0_21, %c0_22] : memref<9x8x8xbf16, #tpu.memory_space<vmem>>, vector<1x8x8xbf16>
    %47 = vector.shape_cast %46 : vector<1x8x8xbf16> to vector<8x8xbf16>
    %cst_23 = arith.constant dense<0.000000e+00> : vector<64x8xf32>
    %48 = tpu.matmul %45, %47, %cst_23 {dimension_numbers = #tpu.dot_dimension_numbers<[1], [0], [0], [1], [0, 0, 1, 1], [], []>} : vector<64x8xbf16>, vector<8x8xbf16>, vector<64x8xf32> -> vector<64x8xf32>
    %49 = arith.addf %42, %48 : vector<64x8xf32>
    %50 = vector.extract_strided_slice %1 {offsets = [0, 2, 1, 0], sizes = [1, 8, 8, 8], strides = [1, 1, 1, 1]} : vector<1x10x10x8xf32> to vector<1x8x8x8xf32>
    %51 = vector.shape_cast %50 : vector<1x8x8x8xf32> to vector<64x8xf32>
    %52 = arith.truncf %51 : vector<64x8xf32> to vector<64x8xbf16>
    %c7 = arith.constant 7 : index
    %c0_24 = arith.constant 0 : index
    %c0_25 = arith.constant 0 : index
    %53 = vector.load %arg2[%c7, %c0_24, %c0_25] : memref<9x8x8xbf16, #tpu.memory_space<vmem>>, vector<1x8x8xbf16>
    %54 = vector.shape_cast %53 : vector<1x8x8xbf16> to vector<8x8xbf16>
    %cst_26 = arith.constant dense<0.000000e+00> : vector<64x8xf32>
    %55 = tpu.matmul %52, %54, %cst_26 {dimension_numbers = #tpu.dot_dimension_numbers<[1], [0], [0], [1], [0, 0, 1, 1], [], []>} : vector<64x8xbf16>, vector<8x8xbf16>, vector<64x8xf32> -> vector<64x8xf32>
    %56 = arith.addf %49, %55 : vector<64x8xf32>
    %57 = vector.extract_strided_slice %1 {offsets = [0, 2, 2, 0], sizes = [1, 8, 8, 8], strides = [1, 1, 1, 1]} : vector<1x10x10x8xf32> to vector<1x8x8x8xf32>
    %58 = vector.shape_cast %57 : vector<1x8x8x8xf32> to vector<64x8xf32>
    %59 = arith.truncf %58 : vector<64x8xf32> to vector<64x8xbf16>
    %c8 = arith.constant 8 : index
    %c0_27 = arith.constant 0 : index
    %c0_28 = arith.constant 0 : index
    %60 = vector.load %arg2[%c8, %c0_27, %c0_28] : memref<9x8x8xbf16, #tpu.memory_space<vmem>>, vector<1x8x8xbf16>
    %61 = vector.shape_cast %60 : vector<1x8x8xbf16> to vector<8x8xbf16>
    %cst_29 = arith.constant dense<0.000000e+00> : vector<64x8xf32>
    %62 = tpu.matmul %59, %61, %cst_29 {dimension_numbers = #tpu.dot_dimension_numbers<[1], [0], [0], [1], [0, 0, 1, 1], [], []>} : vector<64x8xbf16>, vector<8x8xbf16>, vector<64x8xf32> -> vector<64x8xf32>
    %63 = arith.addf %56, %62 : vector<64x8xf32>
    %c0_30 = arith.constant 0 : index
    %c0_31 = arith.constant 0 : index
    %64 = vector.load %arg3[%c0_30, %c0_31] : memref<1x8xf32, #tpu.memory_space<vmem>>, vector<1x8xf32>
    %65 = vector.broadcast %64 : vector<1x8xf32> to vector<64x8xf32>
    %66 = arith.addf %63, %65 : vector<64x8xf32>
    %c0_32 = arith.constant 0 : index
    %c0_33 = arith.constant 0 : index
    %c0_34 = arith.constant 0 : index
    %c0_35 = arith.constant 0 : index
    %67 = vector.load %arg4[%c0_32, %c0_33, %c0_34, %c0_35] : memref<1x10x10x8xbf16, #tpu.memory_space<vmem>>, vector<1x10x10x8xbf16>
    %68 = arith.extf %67 : vector<1x10x10x8xbf16> to vector<1x10x10x8xf32>
    %69 = vector.extract_strided_slice %68 {offsets = [0, 1, 1, 0], sizes = [1, 8, 8, 8], strides = [1, 1, 1, 1]} : vector<1x10x10x8xf32> to vector<1x8x8x8xf32>
    %70 = vector.shape_cast %69 : vector<1x8x8x8xf32> to vector<64x8xf32>
    %71 = arith.addf %66, %70 : vector<64x8xf32>
    %cst_36 = arith.constant 0.000000e+00 : f32
    %72 = vector.broadcast %cst_36 : f32 to vector<64x8xf32>
    %73 = arith.maximumf %71, %72 : vector<64x8xf32>
    %74 = vector.shape_cast %73 : vector<64x8xf32> to vector<1x8x8x8xf32>
    %75 = arith.truncf %74 : vector<1x8x8x8xf32> to vector<1x8x8x8xbf16>
    %c0_37 = arith.constant 0 : index
    %c0_38 = arith.constant 0 : index
    %c0_39 = arith.constant 0 : index
    %c0_40 = arith.constant 0 : index
    %76 = vector.load %arg5[%c0_37, %c0_38, %c0_39, %c0_40] : memref<1x8x8x8xbf16, #tpu.memory_space<vmem>>, vector<1x8x8x8xbf16>
    tpu.vector_store %arg5[%c0_37, %c0_38, %c0_39, %c0_40], %75 {strides = array<i32>} : memref<1x8x8x8xbf16, #tpu.memory_space<vmem>>, vector<1x8x8x8xbf16>,
    return
  }
  func.func @transform_0(%arg0: i32) -> (i32, i32, i32, i32) {
    %c0_i32 = arith.constant 0 : i32
    %c0_i32_0 = arith.constant 0 : i32
    %c0_i32_1 = arith.constant 0 : i32
    %c0_i32_2 = arith.constant 0 : i32
    return %arg0, %c0_i32, %c0_i32_0, %c0_i32_1 : i32, i32, i32, i32
  }
  func.func @transform_1(%arg0: i32) -> (i32, i32, i32) {
    %c0_i32 = arith.constant 0 : i32
    %c0_i32_0 = arith.constant 0 : i32
    %c0_i32_1 = arith.constant 0 : i32
    %c0_i32_2 = arith.constant 0 : i32
    return %c0_i32, %c0_i32_0, %c0_i32_1 : i32, i32, i32
  }
  func.func @transform_2(%arg0: i32) -> (i32, i32) {
    %c0_i32 = arith.constant 0 : i32
    %c0_i32_0 = arith.constant 0 : i32
    %c0_i32_1 = arith.constant 0 : i32
    return %c0_i32, %c0_i32_0 : i32, i32
  }
  func.func @transform_3(%arg0: i32) -> (i32, i32, i32, i32) {
    %c0_i32 = arith.constant 0 : i32
    %c0_i32_0 = arith.constant 0 : i32
    %c0_i32_1 = arith.constant 0 : i32
    %c0_i32_2 = arith.constant 0 : i32
    return %arg0, %c0_i32, %c0_i32_0, %c0_i32_1 : i32, i32, i32, i32
  }
  func.func @transform_4(%arg0: i32) -> (i32, i32, i32, i32) {
    %c0_i32 = arith.constant 0 : i32
    %c0_i32_0 = arith.constant 0 : i32
    %c0_i32_1 = arith.constant 0 : i32
    %c0_i32_2 = arith.constant 0 : i32
    return %arg0, %c0_i32, %c0_i32_0, %c0_i32_1 : i32, i32, i32, i32
  }
}

module attributes {stable_mosaic.version = 11 : i64} {
  func.func @_conv1_shortcut_kernel(%arg0: i32, %arg1: memref<1x9x9x16xbf16, #tpu.memory_space<vmem>>, %arg2: memref<4x16x8xbf16, #tpu.memory_space<vmem>>, %arg3: memref<1x8xf32, #tpu.memory_space<vmem>>, %arg4: memref<1x16x8xbf16, #tpu.memory_space<vmem>>, %arg5: memref<1x8xf32, #tpu.memory_space<vmem>>, %arg6: memref<1x10x10x8xbf16, #tpu.memory_space<vmem>>, %arg7: memref<1x10x10x8xbf16, #tpu.memory_space<vmem>>) attributes {dimension_semantics = [#tpu.dimension_semantics<parallel>], iteration_bounds = array<i64: 2>, scalar_prefetch = 0 : i64, scratch_operands = 0 : i64, tpu.core_type = #tpu.core_type<tc>, window_params = [{transform_indices = @transform_0, window_bounds = array<i64: 1, 9, 9, 16>}, {pipeline_mode = #tpu.pipeline_mode<synchronous>, transform_indices = @transform_1, window_bounds = array<i64: 4, 16, 8>}, {pipeline_mode = #tpu.pipeline_mode<synchronous>, transform_indices = @transform_2, window_bounds = array<i64: 1, 8>}, {pipeline_mode = #tpu.pipeline_mode<synchronous>, transform_indices = @transform_3, window_bounds = array<i64: 1, 16, 8>}, {pipeline_mode = #tpu.pipeline_mode<synchronous>, transform_indices = @transform_4, window_bounds = array<i64: 1, 8>}, {transform_indices = @transform_5, window_bounds = array<i64: 1, 10, 10, 8>}, {transform_indices = @transform_6, window_bounds = array<i64: 1, 10, 10, 8>}]} {
    %c0 = arith.constant 0 : index
    %c0_0 = arith.constant 0 : index
    %c0_1 = arith.constant 0 : index
    %c0_2 = arith.constant 0 : index
    %0 = vector.load %arg1[%c0, %c0_0, %c0_1, %c0_2] : memref<1x9x9x16xbf16, #tpu.memory_space<vmem>>, vector<1x9x9x16xbf16>
    %1 = arith.extf %0 : vector<1x9x9x16xbf16> to vector<1x9x9x16xf32>
    %2 = vector.extract_strided_slice %1 {offsets = [0, 0, 0, 0], sizes = [1, 8, 8, 16], strides = [1, 1, 1, 1]} : vector<1x9x9x16xf32> to vector<1x8x8x16xf32>
    %3 = vector.shape_cast %2 : vector<1x8x8x16xf32> to vector<64x16xf32>
    %4 = arith.truncf %3 : vector<64x16xf32> to vector<64x16xbf16>
    %c0_3 = arith.constant 0 : index
    %c0_4 = arith.constant 0 : index
    %c0_5 = arith.constant 0 : index
    %5 = vector.load %arg2[%c0_3, %c0_4, %c0_5] : memref<4x16x8xbf16, #tpu.memory_space<vmem>>, vector<1x16x8xbf16>
    %6 = vector.shape_cast %5 : vector<1x16x8xbf16> to vector<16x8xbf16>
    %cst = arith.constant dense<0.000000e+00> : vector<64x8xf32>
    %7 = tpu.matmul %4, %6, %cst {dimension_numbers = #tpu.dot_dimension_numbers<[1], [0], [0], [1], [0, 0, 1, 1], [], []>} : vector<64x16xbf16>, vector<16x8xbf16>, vector<64x8xf32> -> vector<64x8xf32>
    %8 = vector.extract_strided_slice %1 {offsets = [0, 0, 1, 0], sizes = [1, 8, 8, 16], strides = [1, 1, 1, 1]} : vector<1x9x9x16xf32> to vector<1x8x8x16xf32>
    %9 = vector.shape_cast %8 : vector<1x8x8x16xf32> to vector<64x16xf32>
    %10 = arith.truncf %9 : vector<64x16xf32> to vector<64x16xbf16>
    %c1 = arith.constant 1 : index
    %c0_6 = arith.constant 0 : index
    %c0_7 = arith.constant 0 : index
    %11 = vector.load %arg2[%c1, %c0_6, %c0_7] : memref<4x16x8xbf16, #tpu.memory_space<vmem>>, vector<1x16x8xbf16>
    %12 = vector.shape_cast %11 : vector<1x16x8xbf16> to vector<16x8xbf16>
    %cst_8 = arith.constant dense<0.000000e+00> : vector<64x8xf32>
    %13 = tpu.matmul %10, %12, %cst_8 {dimension_numbers = #tpu.dot_dimension_numbers<[1], [0], [0], [1], [0, 0, 1, 1], [], []>} : vector<64x16xbf16>, vector<16x8xbf16>, vector<64x8xf32> -> vector<64x8xf32>
    %14 = arith.addf %7, %13 : vector<64x8xf32>
    %15 = vector.extract_strided_slice %1 {offsets = [0, 1, 0, 0], sizes = [1, 8, 8, 16], strides = [1, 1, 1, 1]} : vector<1x9x9x16xf32> to vector<1x8x8x16xf32>
    %16 = vector.shape_cast %15 : vector<1x8x8x16xf32> to vector<64x16xf32>
    %17 = arith.truncf %16 : vector<64x16xf32> to vector<64x16xbf16>
    %c2 = arith.constant 2 : index
    %c0_9 = arith.constant 0 : index
    %c0_10 = arith.constant 0 : index
    %18 = vector.load %arg2[%c2, %c0_9, %c0_10] : memref<4x16x8xbf16, #tpu.memory_space<vmem>>, vector<1x16x8xbf16>
    %19 = vector.shape_cast %18 : vector<1x16x8xbf16> to vector<16x8xbf16>
    %cst_11 = arith.constant dense<0.000000e+00> : vector<64x8xf32>
    %20 = tpu.matmul %17, %19, %cst_11 {dimension_numbers = #tpu.dot_dimension_numbers<[1], [0], [0], [1], [0, 0, 1, 1], [], []>} : vector<64x16xbf16>, vector<16x8xbf16>, vector<64x8xf32> -> vector<64x8xf32>
    %21 = arith.addf %14, %20 : vector<64x8xf32>
    %22 = vector.extract_strided_slice %1 {offsets = [0, 1, 1, 0], sizes = [1, 8, 8, 16], strides = [1, 1, 1, 1]} : vector<1x9x9x16xf32> to vector<1x8x8x16xf32>
    %23 = vector.shape_cast %22 : vector<1x8x8x16xf32> to vector<64x16xf32>
    %24 = arith.truncf %23 : vector<64x16xf32> to vector<64x16xbf16>
    %c3 = arith.constant 3 : index
    %c0_12 = arith.constant 0 : index
    %c0_13 = arith.constant 0 : index
    %25 = vector.load %arg2[%c3, %c0_12, %c0_13] : memref<4x16x8xbf16, #tpu.memory_space<vmem>>, vector<1x16x8xbf16>
    %26 = vector.shape_cast %25 : vector<1x16x8xbf16> to vector<16x8xbf16>
    %cst_14 = arith.constant dense<0.000000e+00> : vector<64x8xf32>
    %27 = tpu.matmul %24, %26, %cst_14 {dimension_numbers = #tpu.dot_dimension_numbers<[1], [0], [0], [1], [0, 0, 1, 1], [], []>} : vector<64x16xbf16>, vector<16x8xbf16>, vector<64x8xf32> -> vector<64x8xf32>
    %28 = arith.addf %21, %27 : vector<64x8xf32>
    %c0_15 = arith.constant 0 : index
    %c0_16 = arith.constant 0 : index
    %29 = vector.load %arg3[%c0_15, %c0_16] : memref<1x8xf32, #tpu.memory_space<vmem>>, vector<1x8xf32>
    %30 = vector.broadcast %29 : vector<1x8xf32> to vector<64x8xf32>
    %31 = arith.addf %28, %30 : vector<64x8xf32>
    %cst_17 = arith.constant 0.000000e+00 : f32
    %32 = vector.broadcast %cst_17 : f32 to vector<64x8xf32>
    %33 = arith.maximumf %31, %32 : vector<64x8xf32>
    %34 = vector.extract_strided_slice %1 {offsets = [0, 0, 0, 0], sizes = [1, 8, 8, 16], strides = [1, 1, 1, 1]} : vector<1x9x9x16xf32> to vector<1x8x8x16xf32>
    %35 = vector.shape_cast %34 : vector<1x8x8x16xf32> to vector<64x16xf32>
    %36 = arith.truncf %35 : vector<64x16xf32> to vector<64x16xbf16>
    %c0_18 = arith.constant 0 : index
    %c0_19 = arith.constant 0 : index
    %c0_20 = arith.constant 0 : index
    %37 = vector.load %arg4[%c0_18, %c0_19, %c0_20] : memref<1x16x8xbf16, #tpu.memory_space<vmem>>, vector<1x16x8xbf16>
    %38 = vector.shape_cast %37 : vector<1x16x8xbf16> to vector<16x8xbf16>
    %cst_21 = arith.constant dense<0.000000e+00> : vector<64x8xf32>
    %39 = tpu.matmul %36, %38, %cst_21 {dimension_numbers = #tpu.dot_dimension_numbers<[1], [0], [0], [1], [0, 0, 1, 1], [], []>} : vector<64x16xbf16>, vector<16x8xbf16>, vector<64x8xf32> -> vector<64x8xf32>
    %c0_22 = arith.constant 0 : index
    %c0_23 = arith.constant 0 : index
    %40 = vector.load %arg5[%c0_22, %c0_23] : memref<1x8xf32, #tpu.memory_space<vmem>>, vector<1x8xf32>
    %41 = vector.broadcast %40 : vector<1x8xf32> to vector<64x8xf32>
    %42 = arith.addf %39, %41 : vector<64x8xf32>
    %43 = vector.shape_cast %33 : vector<64x8xf32> to vector<1x8x8x8xf32>
    %44 = arith.truncf %43 : vector<1x8x8x8xf32> to vector<1x8x8x8xbf16>
    %45 = vector.shape_cast %42 : vector<64x8xf32> to vector<1x8x8x8xf32>
    %46 = arith.truncf %45 : vector<1x8x8x8xf32> to vector<1x8x8x8xbf16>
    %cst_24 = arith.constant 0.000000e+00 : bf16
    %47 = vector.broadcast %cst_24 : bf16 to vector<1x10x10x8xbf16>
    %c0_25 = arith.constant 0 : index
    %c0_26 = arith.constant 0 : index
    %c0_27 = arith.constant 0 : index
    %c0_28 = arith.constant 0 : index
    %48 = vector.load %arg6[%c0_25, %c0_26, %c0_27, %c0_28] : memref<1x10x10x8xbf16, #tpu.memory_space<vmem>>, vector<1x10x10x8xbf16>
    tpu.vector_store %arg6[%c0_25, %c0_26, %c0_27, %c0_28], %47 {strides = array<i32>} : memref<1x10x10x8xbf16, #tpu.memory_space<vmem>>, vector<1x10x10x8xbf16>,
    %c0_29 = arith.constant 0 : index
    %c1_30 = arith.constant 1 : index
    %c1_31 = arith.constant 1 : index
    %c0_32 = arith.constant 0 : index
    %49 = vector.load %arg6[%c0_29, %c1_30, %c1_31, %c0_32] : memref<1x10x10x8xbf16, #tpu.memory_space<vmem>>, vector<1x8x8x8xbf16>
    tpu.vector_store %arg6[%c0_29, %c1_30, %c1_31, %c0_32], %44 {strides = array<i32>} : memref<1x10x10x8xbf16, #tpu.memory_space<vmem>>, vector<1x8x8x8xbf16>,
    %cst_33 = arith.constant 0.000000e+00 : bf16
    %50 = vector.broadcast %cst_33 : bf16 to vector<1x10x10x8xbf16>
    %c0_34 = arith.constant 0 : index
    %c0_35 = arith.constant 0 : index
    %c0_36 = arith.constant 0 : index
    %c0_37 = arith.constant 0 : index
    %51 = vector.load %arg7[%c0_34, %c0_35, %c0_36, %c0_37] : memref<1x10x10x8xbf16, #tpu.memory_space<vmem>>, vector<1x10x10x8xbf16>
    tpu.vector_store %arg7[%c0_34, %c0_35, %c0_36, %c0_37], %50 {strides = array<i32>} : memref<1x10x10x8xbf16, #tpu.memory_space<vmem>>, vector<1x10x10x8xbf16>,
    %c0_38 = arith.constant 0 : index
    %c1_39 = arith.constant 1 : index
    %c1_40 = arith.constant 1 : index
    %c0_41 = arith.constant 0 : index
    %52 = vector.load %arg7[%c0_38, %c1_39, %c1_40, %c0_41] : memref<1x10x10x8xbf16, #tpu.memory_space<vmem>>, vector<1x8x8x8xbf16>
    tpu.vector_store %arg7[%c0_38, %c1_39, %c1_40, %c0_41], %46 {strides = array<i32>} : memref<1x10x10x8xbf16, #tpu.memory_space<vmem>>, vector<1x8x8x8xbf16>,
    return
  }
  func.func @transform_0(%arg0: i32) -> (i32, i32, i32, i32) {
    %c0_i32 = arith.constant 0 : i32
    %c0_i32_0 = arith.constant 0 : i32
    %c0_i32_1 = arith.constant 0 : i32
    %c0_i32_2 = arith.constant 0 : i32
    return %arg0, %c0_i32, %c0_i32_0, %c0_i32_1 : i32, i32, i32, i32
  }
  func.func @transform_1(%arg0: i32) -> (i32, i32, i32) {
    %c0_i32 = arith.constant 0 : i32
    %c0_i32_0 = arith.constant 0 : i32
    %c0_i32_1 = arith.constant 0 : i32
    %c0_i32_2 = arith.constant 0 : i32
    return %c0_i32, %c0_i32_0, %c0_i32_1 : i32, i32, i32
  }
  func.func @transform_2(%arg0: i32) -> (i32, i32) {
    %c0_i32 = arith.constant 0 : i32
    %c0_i32_0 = arith.constant 0 : i32
    %c0_i32_1 = arith.constant 0 : i32
    return %c0_i32, %c0_i32_0 : i32, i32
  }
  func.func @transform_3(%arg0: i32) -> (i32, i32, i32) {
    %c0_i32 = arith.constant 0 : i32
    %c0_i32_0 = arith.constant 0 : i32
    %c0_i32_1 = arith.constant 0 : i32
    %c0_i32_2 = arith.constant 0 : i32
    return %c0_i32, %c0_i32_0, %c0_i32_1 : i32, i32, i32
  }
  func.func @transform_4(%arg0: i32) -> (i32, i32) {
    %c0_i32 = arith.constant 0 : i32
    %c0_i32_0 = arith.constant 0 : i32
    %c0_i32_1 = arith.constant 0 : i32
    return %c0_i32, %c0_i32_0 : i32, i32
  }
  func.func @transform_5(%arg0: i32) -> (i32, i32, i32, i32) {
    %c0_i32 = arith.constant 0 : i32
    %c0_i32_0 = arith.constant 0 : i32
    %c0_i32_1 = arith.constant 0 : i32
    %c0_i32_2 = arith.constant 0 : i32
    return %arg0, %c0_i32, %c0_i32_0, %c0_i32_1 : i32, i32, i32, i32
  }
  func.func @transform_6(%arg0: i32) -> (i32, i32, i32, i32) {
    %c0_i32 = arith.constant 0 : i32
    %c0_i32_0 = arith.constant 0 : i32
    %c0_i32_1 = arith.constant 0 : i32
    %c0_i32_2 = arith.constant 0 : i32
    return %arg0, %c0_i32, %c0_i32_0, %c0_i32_1 : i32, i32, i32, i32
  }
}

</mosaic_0001>

<bundles_post_ra>
// kernel: basic_block_forward.3
= control target key start
LH: loop header
LB: loop body
LE: loop exit
PB: predicated region body
PF: predicated region fallthrough
CT: control target
= control target key end

     0   :  { %s1615_s15 = smov 0   ;;  %s2069_s0 = inlined_call_operand.vmem [shape: bf16[2,10,10,8], index: 0, kind: input, shape index: {}]   ;;  %s2070_s1 = inlined_call_operand.vmem [shape: bf16[9,8,8], index: 1, kind: input, shape index: {}]   ;;  %s2071_s2 = inlined_call_operand.vmem [shape: f32[1,8], index: 2, kind: input, shape index: {}]   ;;  %s2072_s3 = inlined_call_operand.vmem [shape: bf16[2,10,10,8], index: 3, kind: input, shape index: {}]   ;;  %s2073_s4 = inlined_call_operand.vmem [shape: bf16[2,8,8,8], index: 4, kind: output, shape index: {}]  }
   0x1 LB: > { %s1351_s16 = sadd.s32 4294967295, %s1588_s15   ;;  %p1355_p0 = scmp.ge.s32.totalorder %s1588_s15, 1  ;;  %s1588_s15 = sphi %s1615_s15, %s14_s15  }
   0x2   : > { %p172_p1 = scmp.lt.s32.totalorder %s1588_s15, 3 }
   0x4   : > { %p173_p2 = pnand %p1355_p0, %p172_p1 }
   0x5   : > { %p203_p3 = scmp.lt.s32.totalorder (!%p173_p2), %s1351_s16, 1 }
   0x6   : > { %176 = sbr.rel (%p173_p2) target bundleno = 308 (0x134), region = 36 }
   0xb   : > { %v1364_v0 = vld [vmem:[%s2070_s1 + $0x4] sm:$0xf]  ;;  %vm332_vm0 = vcmask 1043456   ;;  %v263_v2 = vld [vmem:[%s2070_s1] sm:$0xf]  ;;  %s2075_s16 = smov (!%p203_p3, %s1351_s16), 1 }
   0xc   : > { %1555 = vmatprep.subr.msk.bf16.mxu1 %vm332_vm0, %v1364_v0  ;;  %1554 = vmatprep.subr.msk.bf16.mxu0 %vm332_vm0, %v1364_v0  ;;  %v334_v1 = vsel %vm332_vm0, %v1364_v0, 0  ;;  %v1373_v3 = vld [vmem:[%s2070_s1 + $0x8] sm:$0xf]  ;;  %s1564_s23 = smul.u32 80, %s2075_s16  ;;  %vm280_vm1 = vcmask 1046528   ;;  %vm319_vm2 = vcmask 64512  }
   0xd   : > { %1553 = vmatpush3.bf16.msra.mxu1 %v334_v1  ;;  %1463 = vmatpush3.bf16.msra.mxu0 %v334_v1  ;;  %v1648_v4 = vsel %vm332_vm0, %v263_v2, 0  ;;  %v1670_v19 = vsel %vm332_vm0, %v1373_v3, 0  ;;  %vm481_vm3 = vcmask 1045504   ;;  %vm1275_vm4 = vcmask 60416   ;;  %s1416_s20 = sshll.u32 %s2075_s16, 5 }
   0xe   : > { %1556 = vmatprep.subr.msk.bf16.mxu1 %vm332_vm0, %v263_v2  ;;  %1557 = vmatprep.subr.msk.bf16.mxu0 %vm332_vm0, %v1373_v3  ;;  %s1645_s26 = scalar_lea.vmem %s2069_s0, %s1564_s23  ;;  %s1921_s17 = scalar_lea.vmem %s2072_s3, %s1564_s23 }
   0xf   : > { %v1651_v5 = vld [vmem:[%s1645_s26] sm:$0xf]  ;;  %v220_v6 = vld [vmem:[%s1645_s26 + $0x4] sm:$0x1]  ;;  %v1655_v7 = vld [vmem:[%s1645_s26 + $0x8] sm:$0xf]  ;;  %s2037_s22 = scalar_lea.vmem %s2073_s4, %s1416_s20 }
  0x10   : > { %v222_v8 = vld [vmem:[%s1645_s26 + $0xc] sm:$0x1]  ;;  %v1659_v9 = vld [vmem:[%s1645_s26 + $0x10] sm:$0xf]  ;;  %v224_v10 = vld [vmem:[%s1645_s26 + $0x14] sm:$0x1]  ;;  %v239_v11 = vunpack.c.l.bf16 %v1651_v5  ;;  %v240_v12 = vunpack.c.l.bf16 %v220_v6  ;;  %v241_v13 = vunpack.c.l.bf16 %v1655_v7 }
  0x11   : > { %v242_v14 = vunpack.c.l.bf16 %v222_v8  ;;  %v243_v15 = vunpack.c.l.bf16 %v1659_v9  ;;  %v244_v16 = vunpack.c.l.bf16 %v224_v10  ;;  %v1666_v17 = vld [vmem:[%s1645_s26 + $0x18] sm:$0xf]  ;;  %v226_v18 = vld [vmem:[%s1645_s26 + $0x1c] sm:$0x1]  ;;  %v1673_v24 = vld [vmem:[%s1645_s26 + $0x20] sm:$0xf] }
  0x12   : > { %v281_v20 = vrot.slane %v239_v11, 1  ;;  %v282_v21 = vrot.slane %v240_v12, 1  ;;  %v284_v22 = vrot.slane %v241_v13, 1  ;;  %v482_v23 = vrot.slane %v239_v11, 2  ;;  %v228_v29 = vld [vmem:[%s1645_s26 + $0x24] sm:$0x1] }
  0x13   : > { %v285_v25 = vrot.slane %v242_v14, 1  ;;  %v287_v26 = vrot.slane %v243_v15, 1  ;;  %v288_v27 = vrot.slane %v244_v16, 1  ;;  %v483_v28 = vrot.slane %v240_v12, 2  ;;  %v1678_v33 = vld [vmem:[%s1645_s26 + $0x28] sm:$0xf] }
  0x14   : > { %v283_v30 = vsel %vm280_vm1, %v281_v20, %v282_v21  ;;  %v485_v31 = vrot.slane %v241_v13, 2  ;;  %v486_v32 = vrot.slane %v242_v14, 2  ;;  %v230_v34 = vld [vmem:[%s1645_s26 + $0x2c] sm:$0x1]  ;;  %v488_v37 = vrot.slane %v243_v15, 2 }
  0x15   : > { %v1682_v35 = vsel %vm280_vm1, %v284_v22, %v285_v25  ;;  %v1685_v36 = vsel %vm280_vm1, %v287_v26, %v288_v27  ;;  %v1688_v38 = vld [vmem:[%s1645_s26 + $0x30] sm:$0xf]  ;;  %v232_v39 = vld [vmem:[%s1645_s26 + $0x34] sm:$0x1]  ;;  %v245_v40 = vunpack.c.l.bf16 %v1666_v17  ;;  %v489_v42 = vrot.slane %v244_v16, 2 }
  0x16   : > { %v313_v41 = vpack.c.bf16 %v1682_v35, %v283_v30  ;;  %v1694_v43 = vld [vmem:[%s1645_s26 + $0x38] sm:$0xf]  ;;  %v234_v44 = vld [vmem:[%s1645_s26 + $0x3c] sm:$0x1]  ;;  %v246_v45 = vunpack.c.l.bf16 %v226_v18  ;;  %v247_v46 = vunpack.c.l.bf16 %v1673_v24  ;;  %v248_v47 = vunpack.c.l.bf16 %v228_v29  ;;  %v1387_v22 = vld [vmem:[%s2070_s1 + $0x10] sm:$0xf] }
  0x17   : > { %v249_v48 = vunpack.c.l.bf16 %v1678_v33  ;;  %v250_v49 = vunpack.c.l.bf16 %v230_v34  ;;  %v251_v50 = vunpack.c.l.bf16 %v1688_v38  ;;  %v252_v51 = vunpack.c.l.bf16 %v232_v39 }
  0x18   : > { %1464 = vmatprep.mubr.msk.bf16.mxu0 %vm319_vm2, %v313_v41  ;;  %v253_v52 = vunpack.c.l.bf16 %v1694_v43  ;;  %v254_v53 = vunpack.c.l.bf16 %v234_v44  ;;  %v290_v54 = vrot.slane %v245_v40, 1  ;;  %v291_v55 = vrot.slane %v246_v45, 1  ;;  %v1398_v41 = vld [vmem:[%s2070_s1 + $0x18] sm:$0xf] }
  0x19   : > { %v293_v56 = vrot.slane %v247_v46, 1  ;;  %v294_v57 = vrot.slane %v248_v47, 1  ;;  %v296_v58 = vrot.slane %v249_v48, 1  ;;  %v297_v59 = vrot.slane %v250_v49, 1 }
  0x1a   : > { %v299_v60 = vrot.slane %v251_v50, 1  ;;  %v300_v61 = vrot.slane %v252_v51, 1  ;;  %v302_v62 = vrot.slane %v253_v52, 1  ;;  %v1703_v63 = vsel %vm280_vm1, %v290_v54, %v291_v55 }
  0x1b   : > { %v1706_v0 = vsel %vm280_vm1, %v293_v56, %v294_v57  ;;  %v303_v1 = vrot.slane %v254_v53, 1  ;;  %v491_v2 = vrot.slane %v245_v40, 2  ;;  %v1709_v3 = vsel %vm280_vm1, %v296_v58, %v297_v59  ;;  %v1408_v58 = vld [vmem:[%s2070_s1 + $0x20] sm:$0xf] }
  0x1c   : > { %v1712_v6 = vsel %vm280_vm1, %v299_v60, %v300_v61  ;;  %v1716_v8 = vpack.c.bf16 %v1703_v63, %v1685_v36  ;;  %v492_v10 = vrot.slane %v246_v45, 2  ;;  %v1723_v12 = vpack.c.bf16 %v1709_v3, %v1706_v0 }
  0x1d   : > { %v1719_v11 = vsel %vm280_vm1, %v302_v62, %v303_v1  ;;  %v494_v13 = vrot.slane %v247_v46, 2  ;;  %v1360_v14 = vcombine.low %v1651_v5, %v1655_v7  ;;  %v495_v16 = vrot.slane %v248_v47, 2  ;;  %v1382_v5 = vld [vmem:[%s2070_s1 + $0xc] sm:$0xf]  ;;  %v1392_v46 = vld [vmem:[%s2070_s1 + $0x14] sm:$0xf] }
  0x1e   : > { %v1729_v15 = vpack.c.bf16 %v1719_v11, %v1712_v6  ;;  %v497_v18 = vrot.slane %v249_v48, 2  ;;  %v498_v20 = vrot.slane %v250_v49, 2  ;;  %1465 = vmatmul.mubr.msk.bf16.vlgmr.msra.gmra.mxu0 %vm319_vm2, %v1716_v8  ;;  %1468 = vmatprep.mubr.msk.bf16.mxu1 %vm319_vm2, %v1723_v12  ;;  %v484_v21 = vsel %vm481_vm3, %v482_v23, %v483_v28 }
  0x1f   : > { %1483 = vmatpush3.bf16.msra.mxu0 %v1670_v19  ;;  %v1746_v25 = vsel %vm481_vm3, %v485_v31, %v486_v32  ;;  %v1749_v26 = vsel %vm481_vm3, %v488_v37, %v489_v42  ;;  %v1752_v19 = vsel %vm481_vm3, %v491_v2, %v492_v10  ;;  %v1764_v28 = vsel %vm481_vm3, %v494_v13, %v495_v16  ;;  %v237_v2 = vld [vmem:[%s1645_s26 + $0x48] sm:$0xf] }
  0x20   : > { %1469 = vmatmul.mubr.msk.bf16.vlgmr.msra.gmra.mxu1 %vm319_vm2, %v1729_v15  ;;  %v514_v23 = vpack.c.bf16 %v1746_v25, %v484_v21  ;;  %v1760_v27 = vpack.c.bf16 %v1752_v19, %v1749_v26  ;;  %1559 = vmatprep.subr.msk.bf16.mxu0 %vm332_vm0, %v1387_v22  ;;  %v1767_v29 = vsel %vm481_vm3, %v497_v18, %v498_v20  ;;  %v500_v30 = vrot.slane %v251_v50, 2  ;;  %v235_v50 = vld [vmem:[%s1645_s26 + $0x40] sm:$0xf] }
  0x21   : > { %1473 = vmatpush3.bf16.msra.mxu1 %v1648_v4  ;;  %1474 = vmatprep.mubr.msk.bf16.mxu1 %vm319_vm2, %v1360_v14  ;;  %v1772_v4 = vpack.c.bf16 %v1767_v29, %v1764_v28  ;;  %v501_v31 = vrot.slane %v252_v51, 2  ;;  %v503_v32 = vrot.slane %v253_v52, 2  ;;  %v504_v34 = vrot.slane %v254_v53, 2  ;;  %v236_v51 = vld [vmem:[%s1645_s26 + $0x44] sm:$0x1] }
  0x22   : > { %1558 = vmatprep.subr.msk.bf16.mxu1 %vm332_vm0, %v1382_v5  ;;  %1484 = vmatprep.mubr.msk.bf16.mxu0 %vm319_vm2, %v514_v23  ;;  %v1361_v37 = vcombine.low %v1659_v9, %v1666_v17  ;;  %v727_v39 = vsel %vm332_vm0, %v1387_v22, 0  ;;  %v1362_v40 = vcombine.low %v1673_v24, %v1678_v33  ;;  %v627_v42 = vsel %vm332_vm0, %v1382_v5, 0 }
  0x23   : > { %v502_v44 = vsel %vm481_vm3, %v500_v30, %v501_v31  ;;  %v1789_v45 = vsel %vm481_vm3, %v503_v32, %v504_v34  ;;  %v708_v48 = vpack.c.bf16 %v1685_v36, %v1682_v35  ;;  %v1363_v49 = vcombine.low %v1688_v38, %v1694_v43 }
  0x24   : > { %v1798_v47 = vpack.c.bf16 %v1789_v45, %v502_v44  ;;  %v1378_v52 = vcombine.low %v1655_v7, %v1659_v9  ;;  %v255_v53 = vunpack.c.l.bf16 %v235_v50  ;;  %v256_v54 = vunpack.c.l.bf16 %v236_v51 }
  0x25   : > { %v709_v35 = vpack.c.bf16 %v1706_v0, %v1703_v63  ;;  %v710_v36 = vpack.c.bf16 %v1712_v6, %v1709_v3  ;;  %v1379_v7 = vcombine.low %v1666_v17, %v1673_v24  ;;  %v907_v9 = vsel %vm332_vm0, %v1398_v41, 0  ;;  %v1403_v17 = vld [vmem:[%s2070_s1 + $0x1c] sm:$0xf] }
  0x26   : > { %1485 = vmatmul.mubr.msk.bf16.vlgmr.msra.gmra.mxu0 %vm319_vm2, %v1760_v27  ;;  %v704_v55 = vrot.slane %v255_v53, 1  ;;  %v705_v56 = vrot.slane %v256_v54, 1  ;;  %v1380_v57 = vcombine.low %v1678_v33, %v1688_v38  ;;  %v825_v59 = vsel %vm332_vm0, %v1392_v46, 0 }
  0x27   : > { %1503 = vmatpush3.bf16.msra.mxu0 %v727_v39  ;;  %1488 = vmatprep.mubr.msk.bf16.mxu0 %vm319_vm2, %v1772_v4  ;;  %v1381_v33 = vcombine.low %v1694_v43, %v235_v50  ;;  %v806_v38 = vpack.c.bf16 %v1749_v26, %v1746_v25  ;;  %v807_v61 = vpack.c.bf16 %v1764_v28, %v1752_v19  ;;  %v1081_v62 = vsel %vm332_vm0, %v1408_v58, 0 }
  0x28   : > { %1475 = vmatmul.mubr.msk.bf16.vlgmr.msra.gmra.mxu1 %vm319_vm2, %v1361_v37  ;;  %1561 = vmatprep.subr.msk.bf16.mxu0 %vm332_vm0, %v1398_v41  ;;  %v706_v60 = vsel %vm280_vm1, %v704_v55, %v705_v56  ;;  %v808_v63 = vpack.c.bf16 %v502_v44, %v1767_v29  ;;  %v802_v43 = vrot.slane %v255_v53, 2  ;;  %v803_v0 = vrot.slane %v256_v54, 2 }
  0x29   : > { %1493 = vmatpush3.bf16.msra.mxu1 %v627_v42  ;;  %1478 = vmatprep.mubr.msk.bf16.mxu1 %vm319_vm2, %v1362_v40  ;;  %v711_v24 = vpack.c.bf16 %v706_v60, %v1719_v11  ;;  %v995_v1 = vsel %vm332_vm0, %v1403_v17, 0  ;;  %v1397_v6 = vcombine.low %v235_v50, %v237_v2  ;;  %v238_v11 = vld [vmem:[%s1645_s26 + $0x4c] sm:$0x1]  ;;  %v257_v13 = vunpack.c.l.bf16 %v237_v2 }
  0x2a   : > { %1560 = vmatprep.subr.msk.bf16.mxu1 %vm332_vm0, %v1392_v46  ;;  %v804_v3 = vsel %vm481_vm3, %v802_v43, %v803_v0  ;;  %v258_v14 = vunpack.c.l.bf16 %v238_v11 }
  0x2b   : > { %v809_v10 = vpack.c.bf16 %v804_v3, %v1789_v45  ;;  %v1070_v16 = vrot.slane %v257_v13, 2  ;;  %v984_v20 = vrot.slane %v257_v13, 1 }
  0x2c   : > { %v1071_v18 = vrot.slane %v258_v14, 2  ;;  %v985_v21 = vrot.slane %v258_v14, 1 }
  0x2e   : > { %1489 = vmatmul.mubr.msk.bf16.gmra.mxu0 %vm319_vm2, %v1798_v47  ;;  %v1072_v5 = vsel %vm481_vm3, %v1070_v16, %v1071_v18 }
  0x2f   : > { %1504 = vmatprep.mubr.msk.bf16.mxu0 %vm319_vm2, %v708_v48  ;;  %v1074_v22 = vpack.c.bf16 %v1072_v5, %v804_v3 }
  0x30   : > { %1479 = vmatmul.mubr.msk.bf16.gmra.mxu1 %vm319_vm2, %v1363_v49 }
  0x31   : > { %1494 = vmatprep.mubr.msk.bf16.mxu1 %vm319_vm2, %v1378_v52 }
  0x36   : > { %1505 = vmatmul.mubr.msk.bf16.vlgmr.msra.gmra.mxu0 %vm319_vm2, %v709_v35 }
  0x37   : > { %1523 = vmatpush3.bf16.msra.mxu0 %v907_v9  ;;  %1508 = vmatprep.mubr.msk.bf16.mxu0 %vm319_vm2, %v710_v36 }
  0x38   : > { %1495 = vmatmul.mubr.msk.bf16.vlgmr.msra.gmra.mxu1 %vm319_vm2, %v1379_v7  ;;  %1563 = vmatprep.subr.msk.bf16.mxu0 %vm332_vm0, %v1408_v58 }
  0x39   : > { %1513 = vmatpush3.bf16.msra.mxu1 %v825_v59  ;;  %1498 = vmatprep.mubr.msk.bf16.mxu1 %vm319_vm2, %v1380_v57 }
  0x3a   : > { %1562 = vmatprep.subr.msk.bf16.mxu1 %vm332_vm0, %v1403_v17  ;;  %v1175_v17 = vld [vmem:[%s1921_s17 + $0x8] ss:$16 sps:$4 sm:$0xff]  }
  0x3b   : > { %v1187_v2 = vunpack.c.l.bf16 %v1175_v17 }
  0x3e   : > { %1509 = vmatmul.mubr.msk.bf16.gmra.mxu0 %vm319_vm2, %v711_v24  ;;  %v1176_v24 = vld [vmem:[%s1921_s17 + $0x1c] sm:$0x1] }
  0x3f   : > { %1524 = vmatprep.mubr.msk.bf16.mxu0 %vm319_vm2, %v1361_v37  ;;  %v1192_v43 = vunpack.c.l.bf16 %v1176_v24 }
  0x40   : > { %1499 = vmatmul.mubr.msk.bf16.gmra.mxu1 %vm319_vm2, %v1381_v33  ;;  %v1172_v33 = vld [vmem:[%s1921_s17 + $0xc] sm:$0x1] }
  0x41   : > { %1514 = vmatprep.mubr.msk.bf16.mxu1 %vm319_vm2, %v806_v38  ;;  %v1188_v3 = vunpack.c.l.bf16 %v1172_v33  ;;  %v1226_v18 = vrot.slane %v1192_v43, 1 }
  0x46   : > { %1525 = vmatmul.mubr.msk.bf16.vlgmr.msra.gmra.mxu0 %vm319_vm2, %v1362_v40 }
  0x47   : > { %1543 = vmatpush3.bf16.msra.mxu0 %v1081_v62  ;;  %1528 = vmatprep.mubr.msk.bf16.mxu0 %vm319_vm2, %v1363_v49 }
  0x48   : > { %1515 = vmatmul.mubr.msk.bf16.vlgmr.msra.gmra.mxu1 %vm319_vm2, %v807_v61 }
  0x49   : > { %1533 = vmatpush3.bf16.msra.mxu1 %v995_v1  ;;  %1518 = vmatprep.mubr.msk.bf16.mxu1 %vm319_vm2, %v808_v63  ;;  %v1191_v63 = vunpack.c.h.bf16 %v1175_v17  ;;  %v1948_v17 = vld [vmem:[%s1921_s17 + $0x28] ss:$16 sps:$4 sm:$0xff]  }
  0x4b   : > { %v1225_v16 = vrot.slane %v1191_v63, 1 }
  0x4d   : > { %v1955_v43 = vsel %vm280_vm1, %v1225_v16, %v1226_v18 }
  0x4e   : > { %1529 = vmatmul.mubr.msk.bf16.gmra.mxu0 %vm319_vm2, %v1397_v6 }
  0x4f   : > { %1544 = vmatprep.mubr.msk.bf16.mxu0 %vm319_vm2, %v1760_v27 }
  0x50   : > { %1519 = vmatmul.mubr.msk.bf16.gmra.mxu1 %vm319_vm2, %v809_v10 }
  0x51   : > { %1534 = vmatprep.mubr.msk.bf16.mxu1 %vm319_vm2, %v1716_v8  ;;  %v986_v8 = vsel %vm280_vm1, %v984_v20, %v985_v21  ;;  %v1177_v20 = vld [vmem:[%s1921_s17 + $0x10] ss:$16 sps:$4 sm:$0xff]   ;;  %v1178_v21 = vld [vmem:[%s1921_s17 + $0x24] sm:$0x1] }
  0x52   : > { %v988_v25 = vpack.c.bf16 %v986_v8, %v706_v60 }
  0x56   : > { %1545 = vmatmul.mubr.msk.bf16.vlgmr.msra.gmra.mxu0 %vm319_vm2, %v1772_v4 }
  0x57   : > { %1548 = vmatprep.mubr.msk.bf16.mxu0 %vm319_vm2, %v1798_v47 }
  0x58   : > { %1535 = vmatmul.mubr.msk.bf16.vlgmr.msra.gmra.mxu1 %vm319_vm2, %v1723_v12 }
  0x59   : > { %1538 = vmatprep.mubr.msk.bf16.mxu1 %vm319_vm2, %v1729_v15 }
  0x5e   : > { %1549 = vmatmul.mubr.msk.bf16.gmra.mxu0 %vm319_vm2, %v1074_v22  ;;  %v1219_v22 = vrot.slane %v1187_v2, 1  ;;  %v1189_v2 = vunpack.c.l.bf16 %v1177_v20 }
  0x60   : > { %1539 = vmatmul.mubr.msk.bf16.gmra.mxu1 %vm319_vm2, %v988_v25  ;;  %v1220_v25 = vrot.slane %v1188_v3, 1 }
  0xde   : > { %v1466_v26 = vpop.f32.mrf.mxu0 }
  0xe0   : > { %v1876_v19 = vpop.f32.mrf.mxu1  ;;  %v370_v23 = vpop.f32.mrf.mxu0 }
  0xe2   : > { %v1878_v27 = vpop.f32.mrf.mxu1  ;;  %v1467_v28 = vpop.f32.mrf.mxu0 }
  0xe4   : > { %v1880_v29 = vpop.f32.mrf.mxu1  ;;  %v373_v12 = vpop.f32.mrf.mxu0 }
  0xe6   : > { %v1882_v30 = vpop.f32.mrf.mxu1  ;;  %v1486_v15 = vpop.f32.mrf.mxu0 }
  0xe8   : > { %v1476_v4 = vpop.f32.mrf.mxu1  ;;  %v569_v31 = vpop.f32.mrf.mxu0 }
  0xe9   : > { %v459_v62 = vadd.f32 %v1476_v4, %v1466_v26 }
  0xea   : > { %v450_v32 = vpop.f32.mrf.mxu1  ;;  %v1884_v34 = vpop.f32.mrf.mxu0 }
  0xeb   : > { %v451_v6 = vadd.f32 %v450_v32, %v370_v23  ;;  %v602_v13 = vadd.f32 %v1486_v15, %v459_v62  ;;  %v1174_v32 = vld [vmem:[%s1921_s17 + $0x14] sm:$0x1]  ;;  %v1194_v15 = vunpack.c.l.bf16 %v1178_v21 }
  0xec   : > { %v1477_v37 = vpop.f32.mrf.mxu1  ;;  %v1886_v39 = vpop.f32.mrf.mxu0  ;;  %v1190_v3 = vunpack.c.l.bf16 %v1174_v32 }
  0xed   : > { %v462_v14 = vadd.f32 %v1477_v37, %v1467_v28  ;;  %v600_v26 = vadd.f32 %v569_v31, %v451_v6  ;;  %v1193_v28 = vunpack.c.h.bf16 %v1177_v20  ;;  %v1184_v37 = vld [vmem:[%s1921_s17 + $0x3c] sm:$0x1]  ;;  %v1199_v6 = vunpack.c.h.bf16 %v1948_v17 }
  0xee   : > { %v453_v40 = vpop.f32.mrf.mxu1  ;;  %v1888_v41 = vpop.f32.mrf.mxu0  ;;  %v1229_v21 = vrot.slane %v1194_v15, 1 }
  0xef   : > { %v454_v4 = vadd.f32 %v453_v40, %v373_v12  ;;  %v603_v62 = vadd.f32 %v1884_v34, %v462_v14  ;;  %v1200_v14 = vunpack.c.l.bf16 %v1184_v37  ;;  %v1228_v20 = vrot.slane %v1193_v28, 1 }
  0xf0   : > { %v1480_v42 = vpop.f32.mrf.mxu1  ;;  %v1890_v44 = vpop.f32.mrf.mxu0 }
  0xf1   : > { %v475_v31 = vadd.f32 %v1480_v42, %v1876_v19  ;;  %v601_v34 = vadd.f32 %v1886_v39, %v454_v4  ;;  %v1237_v4 = vrot.slane %v1199_v6, 1  ;;  %v1238_v28 = vrot.slane %v1200_v14, 1  ;;  %v1186_v6 = vld [vmem:[%s1921_s17 + $0x44] sm:$0x1] }
  0xf2   : > { %v1892_v45 = vpop.f32.mrf.mxu1  ;;  %v1894_v46 = vpop.f32.mrf.mxu0 }
  0xf3   : > { %v467_v16 = vadd.f32 %v1892_v45, %v1878_v27 }
  0xf4   : > { %v1896_v47 = vpop.f32.mrf.mxu1  ;;  %v1898_v48 = vpop.f32.mrf.mxu0 }
  0xf5   : > { %v478_v19 = vadd.f32 %v1896_v47, %v1880_v29  ;;  %v1223_v47 = vrot.slane %v1190_v3, 1  ;;  %v2004_v3 = vsel %vm280_vm1, %v1237_v4, %v1238_v28  ;;  %v1182_v28 = vld [vmem:[%s1921_s17 + $0x34] sm:$0x1] }
  0xf6   : > { %v1900_v49 = vpop.f32.mrf.mxu1  ;;  %v1506_v50 = vpop.f32.mrf.mxu0 }
  0xf7   : > { %v470_v27 = vadd.f32 %v1900_v49, %v1882_v30 }
  0xf8   : > { %v1496_v51 = vpop.f32.mrf.mxu1  ;;  %v1902_v52 = vpop.f32.mrf.mxu0 }
  0xf9   : > { %v696_v23 = vadd.f32 %v1496_v51, %v602_v13  ;;  %v1963_v51 = vsel %vm280_vm1, %v1219_v22, %v1220_v25 }
  0xfa   : > { %v663_v53 = vpop.f32.mrf.mxu1  ;;  %v1904_v54 = vpop.f32.mrf.mxu0 }
  0xfb   : > { %v694_v63 = vadd.f32 %v663_v53, %v600_v26  ;;  %v796_v53 = vadd.f32 %v1506_v50, %v696_v23  ;;  %v1222_v50 = vrot.slane %v1189_v2, 1  ;;  %v606_v26 = vadd.f32 %v1888_v41, %v475_v31  ;;  %v2000_v31 = vld [vmem:[%s1921_s17 + $0x30] ss:$16 sps:$4 sm:$0xff]  }
  0xfc   : > { %v1497_v35 = vpop.f32.mrf.mxu1  ;;  %v1906_v36 = vpop.f32.mrf.mxu0 }
  0xfd   : > { %v697_v13 = vadd.f32 %v1497_v35, %v603_v62  ;;  %v794_v22 = vadd.f32 %v1902_v52, %v694_v63  ;;  %v1180_v35 = vld [vmem:[%s1921_s17 + $0x2c] sm:$0x1]  ;;  %v1195_v52 = vunpack.c.l.bf16 %v1948_v17  ;;  %v605_v17 = vadd.f32 %v1898_v48, %v470_v27 }
  0xfe   : > { %v1908_v55 = vpop.f32.mrf.mxu1  ;;  %v1910_v56 = vpop.f32.mrf.mxu0  ;;  %v1196_v49 = vunpack.c.l.bf16 %v1180_v35  ;;  %v1997_v2 = vsel %vm280_vm1, %v1222_v50, %v1223_v47 }
  0xff   : > { %v695_v25 = vadd.f32 %v1908_v55, %v601_v34  ;;  %v797_v23 = vadd.f32 %v1904_v54, %v697_v13  ;;  %v604_v55 = vadd.f32 %v1890_v44, %v467_v16  ;;  %v1231_v13 = vrot.slane %v1195_v52, 1 }
 0x100   : > { %v1912_v7 = vpop.f32.mrf.mxu1  ;;  %v1914_v9 = vpop.f32.mrf.mxu0 }
 0x101   : > { %v700_v41 = vadd.f32 %v1912_v7, %v606_v26  ;;  %v795_v37 = vadd.f32 %v1906_v36, %v695_v25  ;;  %v1202_v25 = vunpack.c.l.bf16 %v1186_v6 }
 0x102   : > { %v1923_v57 = vpop.f32.mrf.mxu1  ;;  %v1925_v58 = vpop.f32.mrf.mxu0 }
 0x103   : > { %v698_v44 = vadd.f32 %v1923_v57, %v604_v55  ;;  %v800_v48 = vadd.f32 %v1910_v56, %v700_v41 }
 0x104   : > { %v1927_v59 = vpop.f32.mrf.mxu1  ;;  %v1929_v60 = vpop.f32.mrf.mxu0 }
 0x105   : > { %v798_v56 = vadd.f32 %v1914_v9, %v698_v44 }
 0x106   : > { %v1934_v38 = vpop.f32.mrf.mxu1  ;;  %v1936_v61 = vpop.f32.mrf.mxu0 }
 0x107   : > { %v699_v57 = vadd.f32 %v1934_v38, %v605_v17 }
 0x108   : > { %v1516_v0 = vpop.f32.mrf.mxu1  ;;  %v1938_v1 = vpop.f32.mrf.mxu0 }
 0x109   : > { %v894_v39 = vadd.f32 %v1516_v0, %v796_v53  ;;  %v607_v0 = vadd.f32 %v1894_v46, %v478_v19  ;;  %v1201_v19 = vunpack.c.h.bf16 %v2000_v31  ;;  %v799_v26 = vadd.f32 %v1929_v60, %v699_v57 }
 0x10a   : > { %v861_v10 = vpop.f32.mrf.mxu1  ;;  %v1940_v11 = vpop.f32.mrf.mxu0 }
 0x10b   : > { %v892_v32 = vadd.f32 %v861_v10, %v794_v22  ;;  %v976_v62 = vadd.f32 %v1936_v61, %v894_v39  ;;  %v1991_v10 = vsel %vm280_vm1, %v1228_v20, %v1229_v21  ;;  %v701_v46 = vadd.f32 %v1927_v59, %v607_v0  ;;  %v2012_v59 = vld [vmem:[%s2071_s2] ss:$0 sm:$0xff] }
 0x10c   : > { %v1517_v5 = vpop.f32.mrf.mxu1  ;;  %v1944_v8 = vpop.f32.mrf.mxu0  ;;  %v1240_v41 = vrot.slane %v1201_v19, 1 }
 0x10d   : > { %v895_v54 = vadd.f32 %v1517_v5, %v797_v23  ;;  %v974_v36 = vadd.f32 %v1938_v1, %v892_v32  ;;  %v1232_v1 = vrot.slane %v1196_v49, 1  ;;  %v801_v38 = vadd.f32 %v1925_v58, %v701_v46 }
 0x10e   : > { %v864_v24 = vpop.f32.mrf.mxu1  ;;  %v1950_v33 = vpop.f32.mrf.mxu0 }
 0x10f   : > { %v893_v61 = vadd.f32 %v864_v24, %v795_v37  ;;  %v977_v24 = vadd.f32 %v1940_v11, %v895_v54  ;;  %v1233_v58 = vsel %vm280_vm1, %v1231_v13, %v1232_v1  ;;  %v1198_v54 = vunpack.c.l.bf16 %v1182_v28 }
 0x110   : > { %v1958_v12 = vpop.f32.mrf.mxu1  ;;  %v1960_v40 = vpop.f32.mrf.mxu0 }
 0x111   : > { %v898_v20 = vadd.f32 %v1958_v12, %v800_v48  ;;  %v975_v39 = vadd.f32 %v1944_v8, %v893_v61 }
 0x112   : > { %v1971_v42 = vpop.f32.mrf.mxu1  ;;  %v1973_v18 = vpop.f32.mrf.mxu0 }
 0x113   : > { %v896_v27 = vadd.f32 %v1971_v42, %v798_v56  ;;  %v980_v52 = vadd.f32 %v1950_v33, %v898_v20  ;;  %v1197_v42 = vunpack.c.l.bf16 %v2000_v31 }
 0x114   : > { %v1521_v45 = vpop.f32.mrf.mxu1  ;;  %v1981_v29 = vpop.f32.mrf.mxu0 }
 0x115   : > { %v899_v9 = vadd.f32 %v1521_v45, %v801_v38 }
 0x116   : > { %v880_v15 = vpop.f32.mrf.mxu1  ;;  %v1546_v30 = vpop.f32.mrf.mxu0 }
 0x117   : > { %v897_v55 = vadd.f32 %v880_v15, %v799_v26 }
 0x118   : > { %v1536_v63 = vpop.f32.mrf.mxu1  ;;  %v1117_v7 = vpop.f32.mrf.mxu0 }
 0x119   : > { %v1064_v5 = vadd.f32 %v1536_v63, %v976_v62  ;;  %v981_v62 = vadd.f32 %v1973_v18, %v899_v9  ;;  %v979_v63 = vadd.f32 %v1981_v29, %v897_v55  ;;  %v1235_v29 = vrot.slane %v1198_v54, 1 }
 0x11a   : > { %v1031_v34 = vpop.f32.mrf.mxu1  ;;  %v1547_v53 = vpop.f32.mrf.mxu0 }
 0x11b   : > { %v1150_v14 = vadd.f32 %v1546_v30, %v1064_v5  ;;  %v1062_v16 = vadd.f32 %v1031_v34, %v974_v36  ;;  %v1241_v36 = vrot.slane %v1202_v25, 1 }
 0x11c   : > { %v1537_v21 = vpop.f32.mrf.mxu1  ;;  %v1120_v22 = vpop.f32.mrf.mxu0 }
 0x11d   : > { %v1165_v50 = vadd.f32 %v2012_v59, %v1150_v14  ;;  %v1148_v11 = vadd.f32 %v1117_v7, %v1062_v16  ;;  %v1065_v35 = vadd.f32 %v1537_v21, %v977_v24 }
 0x11e   : > { %v1034_v47 = vpop.f32.mrf.mxu1  ;;  %v1550_v4 = vpop.f32.mrf.mxu0 }
 0x11f   : > { %v1253_v12 = vadd.f32 %v1955_v43, %v1165_v50  ;;  %v1163_v23 = vadd.f32 %v2012_v59, %v1148_v11  ;;  %v1151_v32 = vadd.f32 %v1547_v53, %v1065_v35  ;;  %v1063_v8 = vadd.f32 %v1034_v47, %v975_v39 }
 0x120   : > { %v1540_v0 = vpop.f32.mrf.mxu1  ;;  %v1133_v60 = vpop.f32.mrf.mxu0  ;;  %v978_v43 = vadd.f32 %v1960_v40, %v896_v27  ;;  %v1234_v53 = vrot.slane %v1197_v42, 1 }
 0x121   : > { %v1261_v45 = vmax.f32 %v1253_v12, 0.0  ;;  %v1251_v30 = vadd.f32 %v1963_v51, %v1163_v23  ;;  %v1166_v49 = vadd.f32 %v2012_v59, %v1151_v32  ;;  %v1149_v37 = vadd.f32 %v1120_v22, %v1063_v8 }
 0x122   : > { %v1068_v33 = vadd.f32 %v1540_v0, %v980_v52  ;;  %v1047_v15 = vpop.f32.mrf.mxu1  ;;  %v1551_v31 = vpop.f32.mrf.mxu0  ;;  %v1236_v39 = vsel %vm280_vm1, %v1234_v53, %v1235_v29 }
 0x123   : > { %v1269_v17 = vpack.c.bf16 %v1261_v45, %v1261_v45  ;;  %v1259_v44 = vmax.f32 %v1251_v30, 0.0  ;;  %v1254_v51 = vadd.f32 %v1991_v10, %v1166_v49  ;;  %v1164_v46 = vadd.f32 %v2012_v59, %v1149_v37 }
 0x124   : > { %v1154_v40 = vadd.f32 %v1550_v4, %v1068_v33  ;;  %v1066_v18 = vadd.f32 %v1047_v15, %v978_v43  ;;  %v1541_v7 = vpop.f32.mrf.mxu1  ;;  %v1136_v56 = vpop.f32.mrf.mxu0 }
 0x125   : > { %1278 = vst.msk [vmem:[%s2037_s22 + $0x8] sm:$0xf] %vm1275_vm4, %v1269_v17  ;;  %v1267_v61 = vpack.c.bf16 %v1259_v44, %v1259_v44  ;;  %v1262_v5 = vmax.f32 %v1254_v51, 0.0  ;;  %v1252_v6 = vadd.f32 %v1997_v2, %v1164_v46  ;;  %v1069_v48 = vadd.f32 %v1541_v7, %v981_v62 }
 0x126   : > { %v1169_v10 = vadd.f32 %v2012_v59, %v1154_v40  ;;  %v1152_v57 = vadd.f32 %v1133_v60, %v1066_v18  ;;  %v1050_v34 = vpop.f32.mrf.mxu1  ;;  %v1242_v2 = vsel %vm280_vm1, %v1240_v41, %v1241_v36 }
 0x127   : > { %1276 = vst.msk [vmem:[%s2037_s22] sm:$0xf] %vm1275_vm4, %v1267_v61  ;;  %v1270_v13 = vpack.c.bf16 %v1262_v5, %v1262_v5  ;;  %v1260_v1 = vmax.f32 %v1252_v6, 0.0  ;;  %v1155_v24 = vadd.f32 %v1551_v31, %v1069_v48  ;;  %v1067_v14 = vadd.f32 %v1050_v34, %v979_v63 }
 0x128   : > { %v1257_v16 = vadd.f32 %v2004_v3, %v1169_v10  ;;  %v1167_v19 = vadd.f32 %v2012_v59, %v1152_v57 }
 0x129   : > { %1279 = vst.msk [vmem:[%s2037_s22 + $0xc] sm:$0xf] %vm1275_vm4, %v1270_v13  ;;  %v1268_v38 = vpack.c.bf16 %v1260_v1, %v1260_v1  ;;  %v1170_v20 = vadd.f32 %v2012_v59, %v1155_v24  ;;  %v1153_v21 = vadd.f32 %v1136_v56, %v1067_v14 }
 0x12a   : > { %v1265_v22 = vmax.f32 %v1257_v16, 0.0  ;;  %v1255_v25 = vadd.f32 %v1233_v58, %v1167_v19 }
 0x12b   : > { %1277 = vst.msk [vmem:[%s2037_s22 + $0x4] sm:$0xf] %vm1275_vm4, %v1268_v38  ;;  %v1258_v3 = vadd.f32 %v1242_v2, %v1170_v20  ;;  %v1168_v50 = vadd.f32 %v2012_v59, %v1153_v21 }
 0x12c   : > { %v1273_v11 = vpack.c.bf16 %v1265_v22, %v1265_v22  ;;  %v1263_v35 = vmax.f32 %v1255_v25, 0.0 }
 0x12d   : > { %v1266_v26 = vmax.f32 %v1258_v3, 0.0  ;;  %v1256_v27 = vadd.f32 %v1236_v39, %v1168_v50 }
 0x12e   : > { %1282 = vst.msk [vmem:[%s2037_s22 + $0x18] sm:$0xf] %vm1275_vm4, %v1273_v11  ;;  %v1271_v9 = vpack.c.bf16 %v1263_v35, %v1263_v35 }
 0x12f   : > { %v1274_v47 = vpack.c.bf16 %v1266_v26, %v1266_v26  ;;  %v1264_v4 = vmax.f32 %v1256_v27, 0.0 }
 0x130   : > { %1280 = vst.msk [vmem:[%s2037_s22 + $0x10] sm:$0xf] %vm1275_vm4, %v1271_v9 }
 0x131   : > { %1283 = vst.msk [vmem:[%s2037_s22 + $0x1c] sm:$0xf] %vm1275_vm4, %v1274_v47  ;;  %v1272_v58 = vpack.c.bf16 %v1264_v4, %v1264_v4 }
 0x133   : > { %1281 = vst.msk [vmem:[%s2037_s22 + $0x14] sm:$0xf] %vm1275_vm4, %v1272_v58 }
 0x134 PF: > { %s14_s15 = sadd.s32 1, %s1588_s15  }
 0x135   : > { %p11_p4 = scmp.ge.s32.totalorder %s14_s15, 4  }
 0x137   :  { %13 = sbr.rel (!%p11_p4) target bundleno = 1 (0x1), region = 77 }

// kernel: basic_block_forward.2
= control target key start
LH: loop header
LB: loop body
LE: loop exit
PB: predicated region body
PF: predicated region fallthrough
CT: control target
= control target key end

     0   :  { %s1586_s21 = smov 0   ;;  %s1968_s0 = inlined_call_operand.vmem [shape: bf16[2,9,9,16], index: 0, kind: input, shape index: {}]   ;;  %s1969_s1 = inlined_call_operand.vmem [shape: bf16[4,16,8], index: 1, kind: input, shape index: {}]   ;;  %s1970_s2 = inlined_call_operand.vmem [shape: f32[1,8], index: 2, kind: input, shape index: {}]   ;;  %s1971_s3 = inlined_call_operand.vmem [shape: bf16[1,16,8], index: 3, kind: input, shape index: {}]   ;;  %s1972_s4 = inlined_call_operand.vmem [shape: f32[1,8], index: 4, kind: input, shape index: {}]   ;;  %s1973_s5 = inlined_call_operand.vmem [shape: bf16[2,10,10,8], index: 5, kind: output, shape index: {0}]   ;;  %s1974_s6 = inlined_call_operand.vmem [shape: bf16[2,10,10,8], index: 6, kind: output, shape index: {1}]  }
   0x1 LB: > { %s1294_s22 = sadd.s32 4294967295, %s1548_s21   ;;  %p1298_p0 = scmp.ge.s32.totalorder %s1548_s21, 1  ;;  %s1548_s21 = sphi %s1586_s21, %s17_s21  }
   0x2   : > { %p215_p1 = scmp.lt.s32.totalorder %s1548_s21, 3 }
   0x4   : > { %p216_p2 = pnand %p1298_p0, %p215_p1 }
   0x5   : > { %p250_p3 = scmp.lt.s32.totalorder (!%p216_p2), %s1294_s22, 1 }
   0x6   : > { %219 = sbr.rel (%p216_p2) target bundleno = 294 (0x126), region = 40 }
   0xb   : > { %v1529_v0 = vld [vmem:[%s1969_s1 + $0x8] sm:$0xff]   ;;  %s1980_s22 = smov (!%p250_p3, %s1294_s22), 1  ;;  %v1602_v1 = vld [vmem:[%s1969_s1] sm:$0xff]   ;;  %v1607_v2 = vld [vmem:[%s1969_s1 + $0x10] sm:$0xff]   ;;  %vm324_vm0 = vcmask 1046528   ;;  %vm370_vm1 = vcmask 130048  }
   0xc   : > { %1516 = vmatprep.subr.bf16.mxu1 %v1529_v0  ;;  %1466 = vmatprep.subr.bf16.mxu0 %v1529_v0  ;;  %s1518_s29 = smul.u32 72, %s1980_s22  ;;  %vm852_vm2 = vcmask 60416   ;;  %vm854_vm3 = vcmask 57344   ;;  %vm980_vm4 = vsmask.f32 7938 }
   0xd   : > { %1517 = vmatpush3.bf16.msra.mxu1 %v1529_v0  ;;  %1467 = vmatpush3.bf16.msra.mxu0 %v1529_v0  ;;  %s1519_s13 = smul.u32 80, %s1980_s22  ;;  %vm986_vm5 = vsmask.f32 256  ;;  %vm1811_vm6 = vmand %vm852_vm2, %vm980_vm4 }
   0xe   : > { %1476 = vmatprep.subr.bf16.mxu1 %v1602_v1  ;;  %1486 = vmatprep.subr.bf16.mxu0 %v1607_v2  ;;  %s1615_s8 = scalar_lea.vmem %s1968_s0, %s1518_s29  ;;  %vm1818_vm7 = vmand %vm854_vm3, %vm986_vm5 }
   0xf   : > { %v266_v3 = vld [vmem:[%s1615_s8] sm:$0xf]  ;;  %v267_v4 = vld [vmem:[%s1615_s8 + $0x4] sm:$0x1]  ;;  %v1620_v5 = vld [vmem:[%s1615_s8 + $0x8] sm:$0xf]  ;;  %s1700_s16 = scalar_lea.vmem %s1973_s5, %s1519_s13  ;;  %s1705_s19 = scalar_lea.vmem %s1974_s6, %s1519_s13 }
  0x10   : > { %v269_v6 = vld [vmem:[%s1615_s8 + $0xc] sm:$0x1]  ;;  %v1624_v7 = vld [vmem:[%s1615_s8 + $0x10] sm:$0xf]  ;;  %v271_v8 = vld [vmem:[%s1615_s8 + $0x14] sm:$0x1]  ;;  %v284_v9 = vunpack.c.l.bf16 %v266_v3  ;;  %v285_v10 = vunpack.c.l.bf16 %v267_v4  ;;  %v286_v11 = vunpack.c.l.bf16 %v1620_v5  ;;  %v1302_v63 = vcombine.low %v266_v3, %v1620_v5 }
  0x11   : > { %v287_v12 = vunpack.c.l.bf16 %v269_v6  ;;  %v288_v13 = vunpack.c.l.bf16 %v1624_v7  ;;  %v289_v14 = vunpack.c.l.bf16 %v271_v8  ;;  %v1630_v15 = vld [vmem:[%s1615_s8 + $0x18] sm:$0xf]  ;;  %v273_v16 = vld [vmem:[%s1615_s8 + $0x1c] sm:$0x1]  ;;  %v1634_v17 = vld [vmem:[%s1615_s8 + $0x20] sm:$0xf]  ;;  %v1318_v59 = vcombine.low %v1620_v5, %v1624_v7 }
  0x12   : > { %v325_v18 = vrot.slane %v284_v9, 1  ;;  %v326_v19 = vrot.slane %v285_v10, 1  ;;  %v328_v20 = vrot.slane %v286_v11, 1  ;;  %v275_v21 = vld [vmem:[%s1615_s8 + $0x24] sm:$0x1]  ;;  %v290_v22 = vunpack.c.l.bf16 %v1630_v15  ;;  %v1534_v4 = vld [vmem:[%s1969_s1 + $0x18] sm:$0xff]  }
  0x13   : > { %v329_v23 = vrot.slane %v287_v12, 1  ;;  %v331_v24 = vrot.slane %v288_v13, 1  ;;  %v332_v25 = vrot.slane %v289_v14, 1  ;;  %v276_v26 = vld [vmem:[%s1615_s8 + $0x28] sm:$0xf]  ;;  %v291_v27 = vunpack.c.l.bf16 %v273_v16  ;;  %v1537_v6 = vld [vmem:[%s1971_s3] sm:$0xff]  }
  0x14   : > { %v327_v28 = vsel %vm324_vm0, %v325_v18, %v326_v19  ;;  %v277_v29 = vld [vmem:[%s1615_s8 + $0x2c] sm:$0x1]  ;;  %v278_v30 = vld [vmem:[%s1615_s8 + $0x30] sm:$0xf]  ;;  %v279_v31 = vld [vmem:[%s1615_s8 + $0x34] sm:$0x1]  ;;  %v292_v32 = vunpack.c.l.bf16 %v1634_v17  ;;  %v293_v33 = vunpack.c.l.bf16 %v275_v21  ;;  %v294_v34 = vunpack.c.l.bf16 %v276_v26 }
  0x15   : > { %v1645_v35 = vsel %vm324_vm0, %v328_v20, %v329_v23  ;;  %v280_v36 = vld [vmem:[%s1615_s8 + $0x38] sm:$0xf]  ;;  %v281_v37 = vld [vmem:[%s1615_s8 + $0x3c] sm:$0x1]  ;;  %v295_v38 = vunpack.c.l.bf16 %v277_v29  ;;  %v296_v39 = vunpack.c.l.bf16 %v278_v30  ;;  %v333_v40 = vsel %vm324_vm0, %v331_v24, %v332_v25 }
  0x16   : > { %v357_v41 = vpack.c.bf16 %v1645_v35, %v327_v28  ;;  %v297_v42 = vunpack.c.l.bf16 %v279_v31  ;;  %v298_v43 = vunpack.c.l.bf16 %v280_v36  ;;  %v299_v44 = vunpack.c.l.bf16 %v281_v37 }
  0x17   : > { %v334_v45 = vrot.slane %v290_v22, 1  ;;  %v335_v46 = vrot.slane %v291_v27, 1  ;;  %v337_v47 = vrot.slane %v292_v32, 1  ;;  %v338_v48 = vrot.slane %v293_v33, 1 }
  0x18   : > { %1468 = vmatprep.mubr.msk.bf16.mxu0 %vm370_vm1, %v357_v41  ;;  %v340_v49 = vrot.slane %v294_v34, 1  ;;  %v341_v50 = vrot.slane %v295_v38, 1  ;;  %v343_v51 = vrot.slane %v296_v39, 1  ;;  %v344_v53 = vrot.slane %v297_v42, 1 }
  0x19   : > { %v336_v52 = vsel %vm324_vm0, %v334_v45, %v335_v46  ;;  %v346_v54 = vrot.slane %v298_v43, 1  ;;  %v347_v55 = vrot.slane %v299_v44, 1  ;;  %v339_v56 = vsel %vm324_vm0, %v337_v47, %v338_v48  ;;  %v1790_v45 = vld [vmem:[%s1972_s4] ss:$0 sm:$0xff] }
  0x1a   : > { %v342_v57 = vsel %vm324_vm0, %v340_v49, %v341_v50  ;;  %v358_v58 = vpack.c.bf16 %v336_v52, %v333_v40  ;;  %v345_v60 = vsel %vm324_vm0, %v343_v51, %v344_v53  ;;  %v1319_v3 = vcombine.low %v1630_v15, %v1634_v17 }
  0x1b   : > { %v348_v61 = vsel %vm324_vm0, %v346_v54, %v347_v55  ;;  %v359_v62 = vpack.c.bf16 %v342_v57, %v339_v56  ;;  %v1320_v5 = vcombine.low %v276_v26, %v278_v30  ;;  %v1303_v8 = vcombine.low %v1624_v7, %v1630_v15  ;;  %v283_v7 = vld [vmem:[%s1615_s8 + $0x44] sm:$0x1] }
  0x1c   : > { %v360_v0 = vpack.c.bf16 %v348_v61, %v345_v60  ;;  %1469 = vmatmul.mubr.msk.bf16.vlgmr.msra.gmra.mxu0 %vm370_vm1, %v358_v58  ;;  %v1305_v10 = vcombine.low %v278_v30, %v280_v36  ;;  %v635_v11 = vpack.c.bf16 %v333_v40, %v1645_v35  ;;  %v301_v13 = vunpack.c.l.bf16 %v283_v7  ;;  %v1796_v58 = vld [vmem:[%s1970_s2] ss:$0 sm:$0xff] }
  0x1d   : > { %1472 = vmatprep.mubr.msk.bf16.mxu1 %vm370_vm1, %v359_v62  ;;  %1487 = vmatpush3.bf16.msra.mxu0 %v1607_v2  ;;  %v1304_v2 = vcombine.low %v1634_v17, %v276_v26  ;;  %v636_v14 = vpack.c.bf16 %v339_v56, %v336_v52  ;;  %v637_v15 = vpack.c.bf16 %v345_v60, %v342_v57  ;;  %v1550_v20 = vmov 0  }
  0x1e   : > { %1473 = vmatmul.mubr.msk.bf16.vlgmr.msra.gmra.mxu1 %vm370_vm1, %v360_v0  ;;  %1488 = vmatprep.mubr.msk.bf16.mxu0 %vm370_vm1, %v1318_v59  ;;  %v632_v17 = vrot.slane %v301_v13, 1  ;;  %860 = vst.msk [vmem:[%s1700_s16 + $0x18] sm:$0xf] %vm852_vm2, %v1550_v20  ;;  %853 = vst.msk [vmem:[%s1700_s16] sm:$0xf] %vm852_vm2, %v1550_v20 }
  0x1f   : > { %1477 = vmatpush3.bf16.msra.mxu1 %v1602_v1  ;;  %1478 = vmatprep.mubr.msk.bf16.mxu1 %vm370_vm1, %v1302_v63  ;;  %v282_v1 = vld [vmem:[%s1615_s8 + $0x40] sm:$0xf]  ;;  %856 = vst.msk [vmem:[%s1700_s16 + $0x8] sm:$0xf] %vm852_vm2, %v1550_v20  ;;  %858 = vst.msk [vmem:[%s1700_s16 + $0x10] sm:$0xf] %vm852_vm2, %v1550_v20 }
  0x20   : > { %1496 = vmatprep.subr.bf16.mxu1 %v1534_v4  ;;  %1506 = vmatprep.subr.bf16.mxu0 %v1537_v6  ;;  %v1321_v9 = vcombine.low %v280_v36, %v282_v1  ;;  %v300_v12 = vunpack.c.l.bf16 %v282_v1  ;;  %862 = vst.msk [vmem:[%s1700_s16 + $0x20] sm:$0xf] %vm852_vm2, %v1550_v20  ;;  %864 = vst.msk [vmem:[%s1700_s16 + $0x28] sm:$0xf] %vm852_vm2, %v1550_v20 }
  0x21   : > { %866 = vst.msk [vmem:[%s1700_s16 + $0x30] sm:$0xf] %vm852_vm2, %v1550_v20  ;;  %868 = vst.msk [vmem:[%s1700_s16 + $0x38] sm:$0xf] %vm852_vm2, %v1550_v20 }
  0x22   : > { %v631_v16 = vrot.slane %v300_v12, 1  ;;  %870 = vst.msk [vmem:[%s1700_s16 + $0x40] sm:$0xf] %vm852_vm2, %v1550_v20  ;;  %872 = vst.msk [vmem:[%s1700_s16 + $0x48] sm:$0xf] %vm852_vm2, %v1550_v20 }
  0x23   : > { %1033 = vst.msk [vmem:[%s1705_s19] sm:$0xf] %vm852_vm2, %v1550_v20  ;;  %1035 = vst.msk [vmem:[%s1705_s19 + $0x8] sm:$0xf] %vm852_vm2, %v1550_v20 }
  0x24   : > { %1489 = vmatmul.mubr.msk.bf16.vlgmr.msra.gmra.mxu0 %vm370_vm1, %v1319_v3  ;;  %v633_v18 = vsel %vm324_vm0, %v631_v16, %v632_v17  ;;  %1037 = vst.msk [vmem:[%s1705_s19 + $0x10] sm:$0xf] %vm852_vm2, %v1550_v20  ;;  %1039 = vst.msk [vmem:[%s1705_s19 + $0x18] sm:$0xf] %vm852_vm2, %v1550_v20 }
  0x25   : > { %1507 = vmatpush3.bf16.msra.mxu0 %v1537_v6  ;;  %1492 = vmatprep.mubr.msk.bf16.mxu0 %vm370_vm1, %v1320_v5  ;;  %v638_v19 = vpack.c.bf16 %v633_v18, %v348_v61  ;;  %1041 = vst.msk [vmem:[%s1705_s19 + $0x20] sm:$0xf] %vm852_vm2, %v1550_v20  ;;  %1043 = vst.msk [vmem:[%s1705_s19 + $0x28] sm:$0xf] %vm852_vm2, %v1550_v20 }
  0x26   : > { %1479 = vmatmul.mubr.msk.bf16.vlgmr.msra.gmra.mxu1 %vm370_vm1, %v1303_v8  ;;  %1045 = vst.msk [vmem:[%s1705_s19 + $0x30] sm:$0xf] %vm852_vm2, %v1550_v20  ;;  %1047 = vst.msk [vmem:[%s1705_s19 + $0x38] sm:$0xf] %vm852_vm2, %v1550_v20 }
  0x27   : > { %1497 = vmatpush3.bf16.msra.mxu1 %v1534_v4  ;;  %1482 = vmatprep.mubr.msk.bf16.mxu1 %vm370_vm1, %v1304_v2  ;;  %1049 = vst.msk [vmem:[%s1705_s19 + $0x40] sm:$0xf] %vm852_vm2, %v1550_v20  ;;  %1051 = vst.msk [vmem:[%s1705_s19 + $0x48] sm:$0xf] %vm852_vm2, %v1550_v20 }
  0x28   : > { %861 = vst.msk [vmem:[%s1700_s16 + $0x1c] sm:$0x1] %vm854_vm3, %v1550_v20  ;;  %855 = vst.msk [vmem:[%s1700_s16 + $0x4] sm:$0x1] %vm854_vm3, %v1550_v20 }
  0x29   : > { %857 = vst.msk [vmem:[%s1700_s16 + $0xc] sm:$0x1] %vm854_vm3, %v1550_v20  ;;  %859 = vst.msk [vmem:[%s1700_s16 + $0x14] sm:$0x1] %vm854_vm3, %v1550_v20 }
  0x2a   : > { %863 = vst.msk [vmem:[%s1700_s16 + $0x24] sm:$0x1] %vm854_vm3, %v1550_v20  ;;  %865 = vst.msk [vmem:[%s1700_s16 + $0x2c] sm:$0x1] %vm854_vm3, %v1550_v20 }
  0x2b   : > { %867 = vst.msk [vmem:[%s1700_s16 + $0x34] sm:$0x1] %vm854_vm3, %v1550_v20  ;;  %869 = vst.msk [vmem:[%s1700_s16 + $0x3c] sm:$0x1] %vm854_vm3, %v1550_v20 }
  0x2c   : > { %1493 = vmatmul.mubr.msk.bf16.gmra.mxu0 %vm370_vm1, %v1321_v9  ;;  %871 = vst.msk [vmem:[%s1700_s16 + $0x44] sm:$0x1] %vm854_vm3, %v1550_v20  ;;  %873 = vst.msk [vmem:[%s1700_s16 + $0x4c] sm:$0x1] %vm854_vm3, %v1550_v20 }
  0x2d   : > { %1508 = vmatprep.mubr.msk.bf16.mxu0 %vm370_vm1, %v1302_v63  ;;  %1034 = vst.msk [vmem:[%s1705_s19 + $0x4] sm:$0x1] %vm854_vm3, %v1550_v20  ;;  %1036 = vst.msk [vmem:[%s1705_s19 + $0xc] sm:$0x1] %vm854_vm3, %v1550_v20 }
  0x2e   : > { %1483 = vmatmul.mubr.msk.bf16.gmra.mxu1 %vm370_vm1, %v1305_v10  ;;  %1038 = vst.msk [vmem:[%s1705_s19 + $0x14] sm:$0x1] %vm854_vm3, %v1550_v20  ;;  %1040 = vst.msk [vmem:[%s1705_s19 + $0x1c] sm:$0x1] %vm854_vm3, %v1550_v20 }
  0x2f   : > { %1498 = vmatprep.mubr.msk.bf16.mxu1 %vm370_vm1, %v635_v11  ;;  %1042 = vst.msk [vmem:[%s1705_s19 + $0x24] sm:$0x1] %vm854_vm3, %v1550_v20  ;;  %1044 = vst.msk [vmem:[%s1705_s19 + $0x2c] sm:$0x1] %vm854_vm3, %v1550_v20 }
  0x30   : > { %1046 = vst.msk [vmem:[%s1705_s19 + $0x34] sm:$0x1] %vm854_vm3, %v1550_v20  ;;  %1048 = vst.msk [vmem:[%s1705_s19 + $0x3c] sm:$0x1] %vm854_vm3, %v1550_v20 }
  0x31   : > { %1050 = vst.msk [vmem:[%s1705_s19 + $0x44] sm:$0x1] %vm854_vm3, %v1550_v20  ;;  %1052 = vst.msk [vmem:[%s1705_s19 + $0x4c] sm:$0x1] %vm854_vm3, %v1550_v20 }
  0x34   : > { %1509 = vmatmul.mubr.msk.bf16.vlgmr.msra.gmra.mxu0 %vm370_vm1, %v1303_v8 }
  0x35   : > { %1512 = vmatprep.mubr.msk.bf16.mxu0 %vm370_vm1, %v1304_v2 }
  0x36   : > { %1499 = vmatmul.mubr.msk.bf16.vlgmr.msra.gmra.mxu1 %vm370_vm1, %v636_v14 }
  0x37   : > { %1502 = vmatprep.mubr.msk.bf16.mxu1 %vm370_vm1, %v637_v15 }
  0x3c   : > { %1513 = vmatmul.mubr.msk.bf16.gmra.mxu0 %vm370_vm1, %v1305_v10 }
  0x3e   : > { %1503 = vmatmul.mubr.msk.bf16.gmra.mxu1 %vm370_vm1, %v638_v19 }
  0xdc   : > { %v1470_v21 = vpop.f32.mrf.mxu0 }
  0xde   : > { %v1474_v22 = vpop.f32.mrf.mxu1  ;;  %v417_v23 = vpop.f32.mrf.mxu0 }
  0xe0   : > { %v433_v24 = vpop.f32.mrf.mxu1  ;;  %v1471_v25 = vpop.f32.mrf.mxu0 }
  0xe2   : > { %v1475_v26 = vpop.f32.mrf.mxu1  ;;  %v420_v27 = vpop.f32.mrf.mxu0 }
  0xe4   : > { %v436_v28 = vpop.f32.mrf.mxu1  ;;  %v1490_v29 = vpop.f32.mrf.mxu0 }
  0xe6   : > { %v1480_v30 = vpop.f32.mrf.mxu1  ;;  %v590_v31 = vpop.f32.mrf.mxu0 }
  0xe7   : > { %v509_v42 = vadd.f32 %v1480_v30, %v1470_v21 }
  0xe8   : > { %v500_v32 = vpop.f32.mrf.mxu1  ;;  %v1491_v33 = vpop.f32.mrf.mxu0 }
  0xe9   : > { %v501_v46 = vadd.f32 %v500_v32, %v417_v23  ;;  %v623_v53 = vadd.f32 %v1490_v29, %v509_v42  ;;  %v1401_v23 = vld [vmem:[%s1705_s19 + $0x1c] sm:$0x1]  ;;  %v1393_v42 = vld [vmem:[%s1705_s19 + $0xc] sm:$0x1] }
  0xea   : > { %v1481_v34 = vpop.f32.mrf.mxu1  ;;  %v593_v35 = vpop.f32.mrf.mxu0 }
  0xeb   : > { %v512_v47 = vadd.f32 %v1481_v34, %v1471_v25  ;;  %v621_v60 = vadd.f32 %v590_v31, %v501_v46 }
  0xec   : > { %v503_v36 = vpop.f32.mrf.mxu1  ;;  %v1494_v37 = vpop.f32.mrf.mxu0 }
  0xed   : > { %v504_v48 = vadd.f32 %v503_v36, %v420_v27  ;;  %v624_v0 = vadd.f32 %v1491_v33, %v512_v47 }
  0xee   : > { %v1484_v38 = vpop.f32.mrf.mxu1  ;;  %v606_v39 = vpop.f32.mrf.mxu0 }
  0xef   : > { %v525_v49 = vadd.f32 %v1484_v38, %v1474_v22  ;;  %v622_v4 = vadd.f32 %v593_v35, %v504_v48  ;;  %v1399_v22 = vld [vmem:[%s1705_s19 + $0x18] sm:$0xf] }
  0xf0   : > { %v516_v40 = vpop.f32.mrf.mxu1  ;;  %v1495_v41 = vpop.f32.mrf.mxu0 }
  0xf1   : > { %v517_v50 = vadd.f32 %v516_v40, %v433_v24  ;;  %v1799_v6 = vadd.f32 %v1494_v37, %v525_v49 }
  0xf2   : > { %v1485_v43 = vpop.f32.mrf.mxu1  ;;  %v609_v44 = vpop.f32.mrf.mxu0 }
  0xf3   : > { %v528_v55 = vadd.f32 %v1485_v43, %v1475_v26  ;;  %v1801_v3 = vadd.f32 %v606_v39, %v517_v50 }
  0xf4   : > { %v519_v51 = vpop.f32.mrf.mxu1  ;;  %v1510_v52 = vpop.f32.mrf.mxu0 }
  0xf5   : > { %v814_v54 = vadd.f32 %v1510_v52, %v1790_v45  ;;  %v520_v56 = vadd.f32 %v519_v51, %v436_v28  ;;  %v1804_v11 = vadd.f32 %v1495_v41, %v528_v55  ;;  %v1391_v41 = vld [vmem:[%s1705_s19 + $0x8] sm:$0xf]  ;;  %v1359_v52 = vld [vmem:[%s1700_s16 + $0x18] sm:$0xf] }
  0xf6   : > { %v1500_v57 = vpop.f32.mrf.mxu1  ;;  %v805_v59 = vpop.f32.mrf.mxu0 }
  0xf7   : > { %v727_v61 = vadd.f32 %v1500_v57, %v623_v53  ;;  %v1435_v62 = vpack.c.bf16 %v814_v54, %v814_v54  ;;  %v806_v63 = vadd.f32 %v1790_v45, %v805_v59  ;;  %v1806_v7 = vadd.f32 %v609_v44, %v520_v56  ;;  %v1361_v53 = vld [vmem:[%s1700_s16 + $0x1c] sm:$0x1] }
  0xf8   : > { %v694_v5 = vpop.f32.mrf.mxu1  ;;  %v1511_v8 = vpop.f32.mrf.mxu0 }
  0xf9   : > { %v742_v2 = vadd.f32 %v1796_v58, %v727_v61  ;;  %v1094_v1 = vshrl.u32 %v1435_v62, 16  ;;  %v1097_v9 = vshll.u32 %v1435_v62, 16  ;;  %v725_v10 = vadd.f32 %v694_v5, %v621_v60 }
  0xfa   : > { %v1433_v12 = vpack.c.bf16 %v806_v63, %v806_v63  ;;  %v1501_v13 = vpop.f32.mrf.mxu1  ;;  %v817_v14 = vadd.f32 %v1511_v8, %v1790_v45  ;;  %v808_v15 = vpop.f32.mrf.mxu0  ;;  %v1403_v63 = vld [vmem:[%s1705_s19 + $0x20] sm:$0xf] }
  0xfb   : > { %v750_v16 = vmax.f32 %v742_v2, 0.0  ;;  %v1096_v18 = vrot.slane %v1094_v1, 7  ;;  %v740_v19 = vadd.f32 %v1796_v58, %v725_v10  ;;  %v728_v20 = vadd.f32 %v1501_v13, %v624_v0  ;;  %v1405_v0 = vld [vmem:[%s1705_s19 + $0x24] sm:$0x1]  ;;  %v1351_v13 = vld [vmem:[%s1700_s16 + $0x8] sm:$0xf] }
  0xfc   : > { %v1078_v24 = vshrl.u32 %v1433_v12, 16  ;;  %v1081_v25 = vshll.u32 %v1433_v12, 16  ;;  %v1436_v26 = vpack.c.bf16 %v817_v14, %v817_v14  ;;  %v809_v27 = vadd.f32 %v1790_v45, %v808_v15  ;;  %v697_v36 = vpop.f32.mrf.mxu1  ;;  %v1514_v5 = vpop.f32.mrf.mxu0  ;;  %v1353_v14 = vld [vmem:[%s1700_s16 + $0xc] sm:$0x1] }
  0xfd   : > { %v1427_v28 = vpack.c.bf16 %v750_v16, %v750_v16  ;;  %v1099_v29 = vor.u32 %v1097_v9, %v1096_v18  ;;  %v1100_v30 = vrot.slane %v1096_v18, 4  ;;  %v748_v31 = vmax.f32 %v740_v19, 0.0 }
  0xfe   : > { %v1080_v32 = vrot.slane %v1078_v24, 7  ;;  %v743_v33 = vadd.f32 %v1796_v58, %v728_v20  ;;  %v1102_v34 = vshrl.u32 %v1436_v26, 16  ;;  %v1105_v35 = vshll.u32 %v1436_v26, 16 }
  0xff   : > { %v915_v37 = vshrl.u32 %v1427_v28, 16  ;;  %v918_v38 = vshll.u32 %v1427_v28, 16  ;;  %v1171_v39 = vsel %vm1811_vm6, %v1099_v29, %v1399_v22  ;;  %v1174_v40 = vsel %vm1818_vm7, %v1100_v30, %v1401_v23  ;;  %v821_v28 = vpop.f32.mrf.mxu0 }
 0x100   : > { %1400 = vst [vmem:[%s1705_s19 + $0x18] sm:$0xf] %v1171_v39  ;;  %1402 = vst [vmem:[%s1705_s19 + $0x1c] sm:$0x1] %v1174_v40  ;;  %v1425_v43 = vpack.c.bf16 %v748_v31, %v748_v31  ;;  %v1083_v44 = vor.u32 %v1081_v25, %v1080_v32  ;;  %v1084_v46 = vrot.slane %v1080_v32, 4  ;;  %v751_v47 = vmax.f32 %v743_v33, 0.0 }
 0x101   : > { %v917_v48 = vrot.slane %v915_v37, 7  ;;  %v1104_v49 = vrot.slane %v1102_v34, 7  ;;  %v726_v50 = vadd.f32 %v697_v36, %v622_v4  ;;  %v1434_v51 = vpack.c.bf16 %v809_v27, %v809_v27  ;;  %v1504_v4 = vpop.f32.mrf.mxu1  ;;  %v1363_v31 = vld [vmem:[%s1700_s16 + $0x20] sm:$0xf]  ;;  %v1365_v32 = vld [vmem:[%s1700_s16 + $0x24] sm:$0x1] }
 0x102   : > { %v899_v54 = vshrl.u32 %v1425_v43, 16  ;;  %v902_v55 = vshll.u32 %v1425_v43, 16  ;;  %v1159_v56 = vsel %vm1811_vm6, %v1083_v44, %v1391_v41  ;;  %v1162_v57 = vsel %vm1818_vm7, %v1084_v46, %v1393_v42  ;;  %v1395_v39 = vld [vmem:[%s1705_s19 + $0x10] sm:$0xf]  ;;  %v1397_v40 = vld [vmem:[%s1705_s19 + $0x14] sm:$0x1] }
 0x103   : > { %v920_v59 = vor.u32 %v918_v38, %v917_v48  ;;  %v921_v60 = vrot.slane %v917_v48, 4  ;;  %1392 = vst [vmem:[%s1705_s19 + $0x8] sm:$0xf] %v1159_v56  ;;  %1394 = vst [vmem:[%s1705_s19 + $0xc] sm:$0x1] %v1162_v57  ;;  %v1428_v61 = vpack.c.bf16 %v751_v47, %v751_v47  ;;  %v1107_v62 = vor.u32 %v1105_v35, %v1104_v49  ;;  %v710_v27 = vpop.f32.mrf.mxu1 }
 0x104   : > { %v901_v8 = vrot.slane %v899_v54, 7  ;;  %v1108_v2 = vrot.slane %v1104_v49, 4  ;;  %v741_v1 = vadd.f32 %v1796_v58, %v726_v50  ;;  %v1086_v9 = vshrl.u32 %v1434_v51, 16  ;;  %v1515_v50 = vpop.f32.mrf.mxu0 }
 0x105   : > { %v998_v10 = vsel %vm1811_vm6, %v920_v59, %v1359_v52  ;;  %v1001_v12 = vsel %vm1818_vm7, %v921_v60, %v1361_v53  ;;  %v923_v15 = vshrl.u32 %v1428_v61, 16  ;;  %v926_v16 = vshll.u32 %v1428_v61, 16  ;;  %v1505_v49 = vpop.f32.mrf.mxu1  ;;  %v1355_v59 = vld [vmem:[%s1700_s16 + $0x10] sm:$0xf]  ;;  %v1357_v60 = vld [vmem:[%s1700_s16 + $0x14] sm:$0x1] }
 0x106   : > { %1360 = vst [vmem:[%s1700_s16 + $0x18] sm:$0xf] %v998_v10  ;;  %1362 = vst [vmem:[%s1700_s16 + $0x1c] sm:$0x1] %v1001_v12  ;;  %v904_v18 = vor.u32 %v902_v55, %v901_v8  ;;  %v905_v19 = vrot.slane %v901_v8, 4  ;;  %v1177_v20 = vsel %vm1811_vm6, %v1107_v62, %v1403_v63  ;;  %v1180_v22 = vsel %vm1818_vm7, %v1108_v2, %v1405_v0 }
 0x107   : > { %v925_v23 = vrot.slane %v923_v15, 7  ;;  %1404 = vst [vmem:[%s1705_s19 + $0x20] sm:$0xf] %v1177_v20  ;;  %1406 = vst [vmem:[%s1705_s19 + $0x24] sm:$0x1] %v1180_v22  ;;  %v749_v24 = vmax.f32 %v741_v1, 0.0  ;;  %v731_v33 = vadd.f32 %v1504_v4, %v1799_v6  ;;  %v830_v34 = vadd.f32 %v1514_v5, %v1790_v45 }
 0x108   : > { %v1088_v25 = vrot.slane %v1086_v9, 7  ;;  %v1089_v26 = vshll.u32 %v1434_v51, 16  ;;  %v983_v29 = vsel %vm1811_vm6, %v904_v18, %v1351_v13  ;;  %v989_v30 = vsel %vm1818_vm7, %v905_v19, %v1353_v14  ;;  %v1415_v8 = vld [vmem:[%s1705_s19 + $0x38] sm:$0xf]  ;;  %v1417_v2 = vld [vmem:[%s1705_s19 + $0x3c] sm:$0x1]  ;;  %v713_v19 = vpop.f32.mrf.mxu1 }
 0x109   : > { %1352 = vst [vmem:[%s1700_s16 + $0x8] sm:$0xf] %v983_v29  ;;  %1354 = vst [vmem:[%s1700_s16 + $0xc] sm:$0x1] %v989_v30  ;;  %v928_v35 = vor.u32 %v926_v16, %v925_v23  ;;  %v929_v36 = vrot.slane %v925_v23, 4  ;;  %v1426_v37 = vpack.c.bf16 %v749_v24, %v749_v24  ;;  %v746_v42 = vadd.f32 %v1796_v58, %v731_v33 }
 0x10a   : > { %v1091_v38 = vor.u32 %v1089_v26, %v1088_v25  ;;  %v1092_v41 = vrot.slane %v1088_v25, 4  ;;  %v1439_v43 = vpack.c.bf16 %v830_v34, %v830_v34  ;;  %v729_v6 = vadd.f32 %v710_v27, %v1801_v3  ;;  %v1375_v22 = vld [vmem:[%s1700_s16 + $0x38] sm:$0xf]  ;;  %v1377_v26 = vld [vmem:[%s1700_s16 + $0x3c] sm:$0x1] }
 0x10b   : > { %v1004_v44 = vsel %vm1811_vm6, %v928_v35, %v1363_v31  ;;  %v1007_v46 = vsel %vm1818_vm7, %v929_v36, %v1365_v32  ;;  %v907_v47 = vshrl.u32 %v1426_v37, 16  ;;  %v910_v48 = vshll.u32 %v1426_v37, 16  ;;  %v1407_v33 = vld [vmem:[%s1705_s19 + $0x28] sm:$0xf]  ;;  %v1409_v34 = vld [vmem:[%s1705_s19 + $0x2c] sm:$0x1] }
 0x10c   : > { %1364 = vst [vmem:[%s1700_s16 + $0x20] sm:$0xf] %v1004_v44  ;;  %1366 = vst [vmem:[%s1700_s16 + $0x24] sm:$0x1] %v1007_v46  ;;  %v1165_v51 = vsel %vm1811_vm6, %v1091_v38, %v1395_v39  ;;  %v1168_v3 = vsel %vm1818_vm7, %v1092_v41, %v1397_v40  ;;  %v754_v52 = vmax.f32 %v746_v42, 0.0  ;;  %v1126_v53 = vshrl.u32 %v1439_v43, 16  ;;  %v824_v41 = vpop.f32.mrf.mxu0 }
 0x10d   : > { %v909_v54 = vrot.slane %v907_v47, 7  ;;  %1396 = vst [vmem:[%s1705_s19 + $0x10] sm:$0xf] %v1165_v51  ;;  %1398 = vst [vmem:[%s1705_s19 + $0x14] sm:$0x1] %v1168_v3  ;;  %v1129_v55 = vshll.u32 %v1439_v43, 16  ;;  %v744_v56 = vadd.f32 %v1796_v58, %v729_v6  ;;  %v822_v57 = vadd.f32 %v1790_v45, %v821_v28 }
 0x10e   : > { %v1431_v61 = vpack.c.bf16 %v754_v52, %v754_v52  ;;  %v1128_v62 = vrot.slane %v1126_v53, 7  ;;  %v732_v63 = vadd.f32 %v1505_v49, %v1804_v11  ;;  %v833_v0 = vadd.f32 %v1515_v50, %v1790_v45  ;;  %v1367_v6 = vld [vmem:[%s1700_s16 + $0x28] sm:$0xf]  ;;  %v1369_v44 = vld [vmem:[%s1700_s16 + $0x2c] sm:$0x1] }
 0x10f   : > { %v912_v4 = vor.u32 %v910_v48, %v909_v54  ;;  %v913_v5 = vrot.slane %v909_v54, 4  ;;  %v752_v1 = vmax.f32 %v744_v56, 0.0  ;;  %v1437_v9 = vpack.c.bf16 %v822_v57, %v822_v57  ;;  %v1419_v56 = vld [vmem:[%s1705_s19 + $0x40] sm:$0xf]  ;;  %v1421_v57 = vld [vmem:[%s1705_s19 + $0x44] sm:$0x1] }
 0x110   : > { %v947_v10 = vshrl.u32 %v1431_v61, 16  ;;  %v950_v12 = vshll.u32 %v1431_v61, 16  ;;  %v1131_v13 = vor.u32 %v1129_v55, %v1128_v62  ;;  %v1132_v14 = vrot.slane %v1128_v62, 4 }
 0x111   : > { %v992_v11 = vsel %vm1811_vm6, %v912_v4, %v1355_v59  ;;  %v995_v15 = vsel %vm1818_vm7, %v913_v5, %v1357_v60  ;;  %v1429_v16 = vpack.c.bf16 %v752_v1, %v752_v1  ;;  %v1110_v18 = vshrl.u32 %v1437_v9, 16  ;;  %v1379_v5 = vld [vmem:[%s1700_s16 + $0x40] sm:$0xf] }
 0x112   : > { %1356 = vst [vmem:[%s1700_s16 + $0x10] sm:$0xf] %v992_v11  ;;  %1358 = vst [vmem:[%s1700_s16 + $0x14] sm:$0x1] %v995_v15  ;;  %v949_v20 = vrot.slane %v947_v10, 7  ;;  %v1195_v23 = vsel %vm1811_vm6, %v1131_v13, %v1415_v8  ;;  %v1198_v24 = vsel %vm1818_vm7, %v1132_v14, %v1417_v2  ;;  %v1113_v25 = vshll.u32 %v1437_v9, 16 }
 0x113   : > { %1416 = vst [vmem:[%s1705_s19 + $0x38] sm:$0xf] %v1195_v23  ;;  %1418 = vst [vmem:[%s1705_s19 + $0x3c] sm:$0x1] %v1198_v24  ;;  %v931_v27 = vshrl.u32 %v1429_v16, 16  ;;  %v934_v28 = vshll.u32 %v1429_v16, 16  ;;  %v747_v30 = vadd.f32 %v1796_v58, %v732_v63  ;;  %v1440_v35 = vpack.c.bf16 %v833_v0, %v833_v0 }
 0x114   : > { %v1112_v29 = vrot.slane %v1110_v18, 7  ;;  %v952_v31 = vor.u32 %v950_v12, %v949_v20  ;;  %v953_v32 = vrot.slane %v949_v20, 4  ;;  %v730_v36 = vadd.f32 %v713_v19, %v1806_v7  ;;  %v1381_v8 = vld [vmem:[%s1700_s16 + $0x44] sm:$0x1]  ;;  %v1411_v16 = vld [vmem:[%s1705_s19 + $0x30] sm:$0xf] }
 0x115   : > { %v933_v37 = vrot.slane %v931_v27, 7  ;;  %v755_v40 = vmax.f32 %v747_v30, 0.0  ;;  %v1134_v46 = vshrl.u32 %v1440_v35, 16  ;;  %v1137_v47 = vshll.u32 %v1440_v35, 16  ;;  %v1413_v18 = vld [vmem:[%s1705_s19 + $0x34] sm:$0x1] }
 0x116   : > { %v1115_v38 = vor.u32 %v1113_v25, %v1112_v29  ;;  %v1116_v39 = vrot.slane %v1112_v29, 4  ;;  %v1022_v42 = vsel %vm1811_vm6, %v952_v31, %v1375_v22  ;;  %v1025_v43 = vsel %vm1818_vm7, %v953_v32, %v1377_v26  ;;  %v1371_v24 = vld [vmem:[%s1700_s16 + $0x30] sm:$0xf]  ;;  %v1373_v25 = vld [vmem:[%s1700_s16 + $0x34] sm:$0x1] }
 0x117   : > { %1376 = vst [vmem:[%s1700_s16 + $0x38] sm:$0xf] %v1022_v42  ;;  %1378 = vst [vmem:[%s1700_s16 + $0x3c] sm:$0x1] %v1025_v43  ;;  %v936_v7 = vor.u32 %v934_v28, %v933_v37  ;;  %v937_v48 = vrot.slane %v933_v37, 4  ;;  %v1432_v51 = vpack.c.bf16 %v755_v40, %v755_v40  ;;  %v1136_v3 = vrot.slane %v1134_v46, 7 }
 0x118   : > { %v1183_v49 = vsel %vm1811_vm6, %v1115_v38, %v1407_v33  ;;  %v1186_v50 = vsel %vm1818_vm7, %v1116_v39, %v1409_v34  ;;  %v745_v52 = vadd.f32 %v1796_v58, %v730_v36  ;;  %v825_v53 = vadd.f32 %v1790_v45, %v824_v41 }
 0x119   : > { %1408 = vst [vmem:[%s1705_s19 + $0x28] sm:$0xf] %v1183_v49  ;;  %1410 = vst [vmem:[%s1705_s19 + $0x2c] sm:$0x1] %v1186_v50  ;;  %v1010_v54 = vsel %vm1811_vm6, %v936_v7, %v1367_v6  ;;  %v1013_v55 = vsel %vm1818_vm7, %v937_v48, %v1369_v44  ;;  %v955_v59 = vshrl.u32 %v1432_v51, 16  ;;  %v1139_v60 = vor.u32 %v1137_v47, %v1136_v3 }
 0x11a   : > { %1368 = vst [vmem:[%s1700_s16 + $0x28] sm:$0xf] %v1010_v54  ;;  %1370 = vst [vmem:[%s1700_s16 + $0x2c] sm:$0x1] %v1013_v55  ;;  %v1140_v61 = vrot.slane %v1136_v3, 4  ;;  %v753_v58 = vmax.f32 %v745_v52, 0.0  ;;  %v1438_v62 = vpack.c.bf16 %v825_v53, %v825_v53 }
 0x11b   : > { %v957_v45 = vrot.slane %v955_v59, 7  ;;  %v958_v63 = vshll.u32 %v1432_v51, 16  ;;  %v1201_v0 = vsel %vm1811_vm6, %v1139_v60, %v1419_v56 }
 0x11c   : > { %v1204_v4 = vsel %vm1818_vm7, %v1140_v61, %v1421_v57  ;;  %1420 = vst [vmem:[%s1705_s19 + $0x40] sm:$0xf] %v1201_v0  ;;  %v1430_v2 = vpack.c.bf16 %v753_v58, %v753_v58  ;;  %v1118_v1 = vshrl.u32 %v1438_v62, 16  ;;  %v1121_v14 = vshll.u32 %v1438_v62, 16 }
 0x11d   : > { %1422 = vst [vmem:[%s1705_s19 + $0x44] sm:$0x1] %v1204_v4  ;;  %v960_v9 = vor.u32 %v958_v63, %v957_v45  ;;  %v961_v10 = vrot.slane %v957_v45, 4 }
 0x11e   : > { %v939_v12 = vshrl.u32 %v1430_v2, 16  ;;  %v1120_v13 = vrot.slane %v1118_v1, 7  ;;  %v942_v20 = vshll.u32 %v1430_v2, 16 }
 0x11f   : > { %v1028_v11 = vsel %vm1811_vm6, %v960_v9, %v1379_v5  ;;  %v1031_v15 = vsel %vm1818_vm7, %v961_v10, %v1381_v8 }
 0x120   : > { %1380 = vst [vmem:[%s1700_s16 + $0x40] sm:$0xf] %v1028_v11  ;;  %1382 = vst [vmem:[%s1700_s16 + $0x44] sm:$0x1] %v1031_v15  ;;  %v941_v19 = vrot.slane %v939_v12, 7  ;;  %v1123_v22 = vor.u32 %v1121_v14, %v1120_v13  ;;  %v1124_v23 = vrot.slane %v1120_v13, 4 }
 0x122   : > { %v944_v26 = vor.u32 %v942_v20, %v941_v19  ;;  %v945_v27 = vrot.slane %v941_v19, 4  ;;  %v1189_v28 = vsel %vm1811_vm6, %v1123_v22, %v1411_v16  ;;  %v1192_v29 = vsel %vm1818_vm7, %v1124_v23, %v1413_v18 }
 0x123   : > { %1412 = vst [vmem:[%s1705_s19 + $0x30] sm:$0xf] %v1189_v28  ;;  %1414 = vst [vmem:[%s1705_s19 + $0x34] sm:$0x1] %v1192_v29 }
 0x124   : > { %v1016_v30 = vsel %vm1811_vm6, %v944_v26, %v1371_v24  ;;  %v1019_v31 = vsel %vm1818_vm7, %v945_v27, %v1373_v25 }
 0x125   : > { %1372 = vst [vmem:[%s1700_s16 + $0x30] sm:$0xf] %v1016_v30  ;;  %1374 = vst [vmem:[%s1700_s16 + $0x34] sm:$0x1] %v1019_v31 }
 0x126 PF: > { %s17_s21 = sadd.s32 1, %s1548_s21  }
 0x127   : > { %p14_p4 = scmp.ge.s32.totalorder %s17_s21, 4  }
 0x129   :  { %16 = sbr.rel (!%p14_p4) target bundleno = 1 (0x1), region = 87 }

</bundles_post_ra>
